<compile_context>
chip_gen: v7x
topology: tpu7x:2x2x1
jax: 0.10.0
libtpu: 0.0.40
codegen_flags: <defaults>
</compile_context>

<pallas_src>
import functools

import jax
import jax.numpy as jnp
from jax import lax
from jax.experimental import pallas as pl
from jax.experimental.pallas import tpu as pltpu


def _round_up(x, m):
    return (x + m - 1) // m * m


# --------------------------------------------------------------------------
# Pallas kernels
# --------------------------------------------------------------------------
def _conv_relu_pool_kernel(pt_ref, w_ref, o_ref, *, gp):
    """Fused conv (transposed matmul) + ReLU + 2x2 max-pool for one image.

    pt_ref : (K, 4*gp)   transposed im2col patches, grouped by pool window
    w_ref  : (Cout, K)   packed conv weight
    o_ref  : (Cout, gp)  pooled output (channels-first, spatial flattened)
    """
    c = jnp.dot(w_ref[...], pt_ref[...], preferred_element_type=jnp.float32)
    c = jnp.maximum(c, 0.0)                                   # ReLU
    # Max over the four pool-window members: static, lane-aligned slices.
    o_ref[...] = jnp.maximum(
        jnp.maximum(c[:, 0 * gp:1 * gp], c[:, 1 * gp:2 * gp]),
        jnp.maximum(c[:, 2 * gp:3 * gp], c[:, 3 * gp:4 * gp]))


def _fc_fused_kernel(x_ref, w1_ref, w2_ref, o_ref):
    """fc2(ReLU(fc1(x))) in a single kernel (both matmuls on the MXU)."""
    h = jnp.dot(x_ref[...], w1_ref[...], preferred_element_type=jnp.float32)
    h = jnp.maximum(h, 0.0)
    o_ref[...] = jnp.dot(h, w2_ref[...], preferred_element_type=jnp.float32)


# --------------------------------------------------------------------------
# Layer wrappers (glue = padding / slicing / reshape; compute = Pallas)
# --------------------------------------------------------------------------
def _pool_grouped_patches(x_nchw, kh, kw, pad, gp):
    """Transposed im2col patches, grouped by 2x2/stride-2/pad-1 pool window.

    Returns (B, K, 4*gp) with K = Cin*kh*kw.  Column t*gp + (ph*PW + pw) holds
    the im2col patch of conv-output pixel (2*ph-1 + t//2, 2*pw-1 + t%2); pool
    members that fall outside the conv output are all-zero columns (conv=0,
    ReLU=0, which can never win the max since all values are >= 0 post-ReLU).
    """
    B, C, H, W = x_nchw.shape
    xp = jnp.pad(x_nchw, ((0, 0), (0, 0), (pad, pad), (pad, pad)))
    OH = H + 2 * pad - kh + 1
    OW = W + 2 * pad - kw + 1
    assert OH % 2 == 0 and OW % 2 == 0
    PH, PW = OH // 2 + 1, OW // 2 + 1
    K = C * kh * kw
    # im2col, channels-first K ordering: K-index = c*(kh*kw) + ki*kw + kj
    cols = [xp[:, :, i:i + OH, j:j + OW] for i in range(kh) for j in range(kw)]
    p = jnp.stack(cols, axis=2).reshape(B, K, OH, OW)
    # Zero-pad the conv-output grid by 1 (the pool's padding).
    pp = jnp.pad(p, ((0, 0), (0, 0), (1, 1), (1, 1)))         # (B, K, 2PH, 2PW)
    groups = []
    for dy in range(2):
        for dx in range(2):
            g = pp[:, :, dy::2, dx::2].reshape(B, K, PH * PW)
            if gp > PH * PW:
                g = jnp.pad(g, ((0, 0), (0, 0), (0, gp - PH * PW)))
            groups.append(g)
    return jnp.concatenate(groups, axis=2)                    # (B, K, 4*gp)


def conv_relu_pool(x_nchw, w_packed, kh, kw, pad):
    """MaxPool2d(2, s=2, p=1)(ReLU(Conv2d(k, stride=1, pad, bias=False)(x))).

    x_nchw   : (B, Cin, H, W)
    w_packed : (Cout, Cin*kh*kw)
    returns  : ((B, Cout, gp) f32, PH, PW); valid pooled pixels live in columns
               [0, PH*PW) (column index = ph*PW + pw), the rest are zeros.
    """
    B, C, H, W = x_nchw.shape
    Cout, K = w_packed.shape
    assert K == C * kh * kw
    OH = H + 2 * pad - kh + 1
    OW = W + 2 * pad - kw + 1
    PH, PW = OH // 2 + 1, OW // 2 + 1
    gp = _round_up(PH * PW, 128)              # lane-dense output width
    pt = _pool_grouped_patches(x_nchw, kh, kw, pad, gp)       # (B, K, 4*gp)

    kernel = functools.partial(_conv_relu_pool_kernel, gp=gp)
    flops = 2 * B * Cout * K * 4 * gp
    bytes_accessed = 4 * (B * K * 4 * gp + Cout * K + B * Cout * gp)
    out = pl.pallas_call(
        kernel,
        out_shape=jax.ShapeDtypeStruct((B, Cout, gp), jnp.float32),
        grid=(B,),
        in_specs=[
            pl.BlockSpec((None, K, 4 * gp), lambda b: (b, 0, 0)),
            pl.BlockSpec((Cout, K), lambda b: (0, 0)),
        ],
        out_specs=pl.BlockSpec((None, Cout, gp), lambda b: (b, 0, 0)),
        compiler_params=pltpu.CompilerParams(
            dimension_semantics=("parallel",)),
        cost_estimate=pl.CostEstimate(flops=flops, transcendentals=0,
                                      bytes_accessed=bytes_accessed),
    )(pt, w_packed)
    return out, PH, PW


def fc_head(x2d, w1_packed, w2_packed):
    """ReLU(x @ w1) @ w2 in one Pallas call."""
    B, K = x2d.shape
    K1, NH = w1_packed.shape
    NH2, N = w2_packed.shape
    assert K == K1 and NH == NH2
    return pl.pallas_call(
        _fc_fused_kernel,
        out_shape=jax.ShapeDtypeStruct((B, N), jnp.float32),
        grid=(1,),
        in_specs=[
            pl.BlockSpec((B, K), lambda i: (0, 0)),
            pl.BlockSpec((K, NH), lambda i: (0, 0)),
            pl.BlockSpec((NH, N), lambda i: (0, 0)),
        ],
        out_specs=pl.BlockSpec((B, N), lambda i: (0, 0)),
        compiler_params=pltpu.CompilerParams(dimension_semantics=("arbitrary",)),
    )(x2d, w1_packed, w2_packed)


# --------------------------------------------------------------------------
# CNN2 model
# --------------------------------------------------------------------------
def init_params(key, in_channels, hidden_channels, num_hiddens, num_classes):
    k1, k2, k3, k4 = jax.random.split(key, 4)
    c2 = hidden_channels * 2
    return {
        # PyTorch-convention shapes: conv = (Cout, Cin, KH, KW), fc = (out, in)
        "conv1_w": 0.05 * jax.random.normal(k1, (hidden_channels, in_channels, 5, 5), jnp.float32),
        "conv2_w": 0.05 * jax.random.normal(k2, (c2, hidden_channels, 5, 5), jnp.float32),
        "fc1_w":   0.05 * jax.random.normal(k3, (num_hiddens, c2 * 8 * 8), jnp.float32),
        "fc2_w":   0.05 * jax.random.normal(k4, (num_classes, num_hiddens), jnp.float32),
    }


def prepare_params(params):
    """One-time weight repack (hoisted out of the per-step forward graph)."""
    c1w, c2w = params["conv1_w"], params["conv2_w"]
    C2 = c2w.shape[0]
    NH = params["fc1_w"].shape[0]
    # Final spatial size is 8x8 (baked into fc1.in_features by the module); the
    # conv kernel pads each channel's 64 pooled pixels to 128 lanes, so fold
    # both the NCHW flatten and that zero padding into fc1's weight.
    G2 = 8 * 8
    GP2 = _round_up(G2, 128)
    fc1 = params["fc1_w"].reshape(NH, C2, G2).transpose(1, 2, 0)   # (C2, G2, NH)
    fc1 = jnp.pad(fc1, ((0, 0), (0, GP2 - G2), (0, 0))).reshape(C2 * GP2, NH)
    return {
        "conv1_w": c1w.reshape(c1w.shape[0], -1),   # (C1, Cin*25)
        "conv2_w": c2w.reshape(C2, -1),             # (C2, C1*25)
        "fc1_w": fc1,                               # (C2*128, NH), zero-padded rows
        "fc2_w": params["fc2_w"].T,                 # (NH, num_classes)
    }


def cnn2_forward(packed, x_nchw):
    x = x_nchw.astype(jnp.float32)
    B = x.shape[0]

    # conv1 + ReLU + maxpool1 (fused)
    a1, PH1, PW1 = conv_relu_pool(x, packed["conv1_w"], 5, 5, pad=1)
    a1 = a1[:, :, :PH1 * PW1].reshape(B, a1.shape[1], PH1, PW1)   # NCHW

    # conv2 + ReLU + maxpool2 (fused)
    a2, PH2, PW2 = conv_relu_pool(a1, packed["conv2_w"], 5, 5, pad=1)
    # a2 is (B, C2, 128) with the valid 8x8 pixels in the first PH2*PW2 columns;
    # fc1's packed weight has matching (zero) rows, so flatten directly.
    assert a2.shape[1] * a2.shape[2] == packed["fc1_w"].shape[0]
    xf = a2.reshape(B, -1)

    # fc1 + ReLU + fc2 (fused)
    return fc_head(xf, packed["fc1_w"], packed["fc2_w"])


# --------------------------------------------------------------------------
# Pure-JAX reference (for verification only)
# --------------------------------------------------------------------------
def cnn2_reference(params, x_nchw):
    hp = lax.Precision.HIGHEST
    dn = ("NCHW", "OIHW", "NCHW")

    def pool(t):
        return lax.reduce_window(t, -jnp.inf, lax.max,
                                 (1, 1, 2, 2), (1, 1, 2, 2),
                                 ((0, 0), (0, 0), (1, 1), (1, 1)))

    x = lax.conv_general_dilated(x_nchw, params["conv1_w"], (1, 1),
                                 ((1, 1), (1, 1)), dimension_numbers=dn, precision=hp)
    x = pool(jnp.maximum(x, 0.0))
    x = lax.conv_general_dilated(x, params["conv2_w"], (1, 1),
                                 ((1, 1), (1, 1)), dimension_numbers=dn, precision=hp)
    x = pool(jnp.maximum(x, 0.0))
    x = x.reshape(x.shape[0], -1)
    x = jnp.maximum(jnp.dot(x, params["fc1_w"].T, precision=hp), 0.0)
    x = jnp.dot(x, params["fc2_w"].T, precision=hp)
    return x


# --------------------------------------------------------------------------
if __name__ == "__main__":
    # Small config consistent with the module: fc1.in_features = 2*hidden*8*8
    # forces 32x32 spatial input (two conv(k5,p1) + two pool(2,p1) stages -> 8x8).
    B, IN_C, HID_C, NUM_HID, NUM_CLS = 2, 3, 8, 32, 10

    key = jax.random.PRNGKey(0)
    pkey, xkey = jax.random.split(key)
    params = init_params(pkey, IN_C, HID_C, NUM_HID, NUM_CLS)
    packed = prepare_params(params)          # one-time weight repack (hoisted)

    x = jax.random.normal(xkey, (B, IN_C, 32, 32), jnp.float32)

    out = jax.jit(cnn2_forward)(packed, x)
    out = jax.block_until_ready(out)
    assert out.shape == (B, NUM_CLS), out.shape

    ref = jax.block_until_ready(cnn2_reference(params, x))
    assert jnp.allclose(out, ref, rtol=1e-3, atol=1e-3), (
        float(jnp.max(jnp.abs(out - ref)))
    )

    print("KERNEL_OK")
</pallas_src>

<mosaic_0001>
module attributes {stable_mosaic.version = 11 : i64} {
  func.func @_conv_relu_pool_kernel(%arg0: i32, %arg1: memref<1x75x1024xf32, #tpu.memory_space<vmem>>, %arg2: memref<8x75xf32, #tpu.memory_space<vmem>>, %arg3: memref<1x8x256xf32, #tpu.memory_space<vmem>>) attributes {dimension_semantics = [#tpu.dimension_semantics<parallel>], iteration_bounds = array<i64: 2>, scalar_prefetch = 0 : i64, scratch_operands = 0 : i64, tpu.core_type = #tpu.core_type<tc>, window_params = [{transform_indices = @transform_0, window_bounds = array<i64: 1, 75, 1024>}, {pipeline_mode = #tpu.pipeline_mode<synchronous>, transform_indices = @transform_1, window_bounds = array<i64: 8, 75>}, {transform_indices = @transform_2, window_bounds = array<i64: 1, 8, 256>}]} {
    %c0 = arith.constant 0 : index
    %c0_0 = arith.constant 0 : index
    %0 = vector.load %arg2[%c0, %c0_0] : memref<8x75xf32, #tpu.memory_space<vmem>>, vector<8x75xf32>
    %c0_1 = arith.constant 0 : index
    %c0_2 = arith.constant 0 : index
    %c0_3 = arith.constant 0 : index
    %1 = vector.load %arg1[%c0_1, %c0_2, %c0_3] : memref<1x75x1024xf32, #tpu.memory_space<vmem>>, vector<1x75x1024xf32>
    %2 = vector.shape_cast %1 : vector<1x75x1024xf32> to vector<75x1024xf32>
    %cst = arith.constant dense<0.000000e+00> : vector<8x1024xf32>
    %3 = tpu.matmul %0, %2, %cst {dimension_numbers = #tpu.dot_dimension_numbers<[1], [0], [0], [1], [0, 0, 1, 1], [], []>} : vector<8x75xf32>, vector<75x1024xf32>, vector<8x1024xf32> -> vector<8x1024xf32>
    %cst_4 = arith.constant 0.000000e+00 : f32
    %4 = vector.broadcast %cst_4 : f32 to vector<8x1024xf32>
    %5 = arith.maximumf %3, %4 : vector<8x1024xf32>
    %6 = vector.extract_strided_slice %5 {offsets = [0, 0], sizes = [8, 256], strides = [1, 1]} : vector<8x1024xf32> to vector<8x256xf32>
    %7 = vector.extract_strided_slice %5 {offsets = [0, 256], sizes = [8, 256], strides = [1, 1]} : vector<8x1024xf32> to vector<8x256xf32>
    %8 = arith.maximumf %6, %7 : vector<8x256xf32>
    %9 = vector.extract_strided_slice %5 {offsets = [0, 512], sizes = [8, 256], strides = [1, 1]} : vector<8x1024xf32> to vector<8x256xf32>
    %10 = vector.extract_strided_slice %5 {offsets = [0, 768], sizes = [8, 256], strides = [1, 1]} : vector<8x1024xf32> to vector<8x256xf32>
    %11 = arith.maximumf %9, %10 : vector<8x256xf32>
    %12 = arith.maximumf %8, %11 : vector<8x256xf32>
    %c0_5 = arith.constant 0 : index
    %c0_6 = arith.constant 0 : index
    %c0_7 = arith.constant 0 : index
    %13 = vector.load %arg3[%c0_5, %c0_6, %c0_7] : memref<1x8x256xf32, #tpu.memory_space<vmem>>, vector<1x8x256xf32>
    %14 = vector.shape_cast %13 : vector<1x8x256xf32> to vector<8x256xf32>
    %15 = vector.shape_cast %12 : vector<8x256xf32> to vector<1x8x256xf32>
    tpu.vector_store %arg3[%c0_5, %c0_6, %c0_7], %15 {strides = array<i32>} : memref<1x8x256xf32, #tpu.memory_space<vmem>>, vector<1x8x256xf32>,
    return
  }
  func.func @transform_0(%arg0: i32) -> (i32, i32, i32) {
    %c0_i32 = arith.constant 0 : i32
    %c0_i32_0 = arith.constant 0 : i32
    %c0_i32_1 = arith.constant 0 : i32
    return %arg0, %c0_i32, %c0_i32_0 : i32, i32, i32
  }
  func.func @transform_1(%arg0: i32) -> (i32, i32) {
    %c0_i32 = arith.constant 0 : i32
    %c0_i32_0 = arith.constant 0 : i32
    %c0_i32_1 = arith.constant 0 : i32
    return %c0_i32, %c0_i32_0 : i32, i32
  }
  func.func @transform_2(%arg0: i32) -> (i32, i32, i32) {
    %c0_i32 = arith.constant 0 : i32
    %c0_i32_0 = arith.constant 0 : i32
    %c0_i32_1 = arith.constant 0 : i32
    return %arg0, %c0_i32, %c0_i32_0 : i32, i32, i32
  }
}

module attributes {stable_mosaic.version = 11 : i64} {
  func.func @_conv_relu_pool_kernel(%arg0: i32, %arg1: memref<1x200x512xf32, #tpu.memory_space<vmem>>, %arg2: memref<16x200xf32, #tpu.memory_space<vmem>>, %arg3: memref<1x16x128xf32, #tpu.memory_space<vmem>>) attributes {dimension_semantics = [#tpu.dimension_semantics<parallel>], iteration_bounds = array<i64: 2>, scalar_prefetch = 0 : i64, scratch_operands = 0 : i64, tpu.core_type = #tpu.core_type<tc>, window_params = [{transform_indices = @transform_0, window_bounds = array<i64: 1, 200, 512>}, {pipeline_mode = #tpu.pipeline_mode<synchronous>, transform_indices = @transform_1, window_bounds = array<i64: 16, 200>}, {transform_indices = @transform_2, window_bounds = array<i64: 1, 16, 128>}]} {
    %c0 = arith.constant 0 : index
    %c0_0 = arith.constant 0 : index
    %0 = vector.load %arg2[%c0, %c0_0] : memref<16x200xf32, #tpu.memory_space<vmem>>, vector<16x200xf32>
    %c0_1 = arith.constant 0 : index
    %c0_2 = arith.constant 0 : index
    %c0_3 = arith.constant 0 : index
    %1 = vector.load %arg1[%c0_1, %c0_2, %c0_3] : memref<1x200x512xf32, #tpu.memory_space<vmem>>, vector<1x200x512xf32>
    %2 = vector.shape_cast %1 : vector<1x200x512xf32> to vector<200x512xf32>
    %cst = arith.constant dense<0.000000e+00> : vector<16x512xf32>
    %3 = tpu.matmul %0, %2, %cst {dimension_numbers = #tpu.dot_dimension_numbers<[1], [0], [0], [1], [0, 0, 1, 1], [], []>} : vector<16x200xf32>, vector<200x512xf32>, vector<16x512xf32> -> vector<16x512xf32>
    %cst_4 = arith.constant 0.000000e+00 : f32
    %4 = vector.broadcast %cst_4 : f32 to vector<16x512xf32>
    %5 = arith.maximumf %3, %4 : vector<16x512xf32>
    %6 = vector.extract_strided_slice %5 {offsets = [0, 0], sizes = [16, 128], strides = [1, 1]} : vector<16x512xf32> to vector<16x128xf32>
    %7 = vector.extract_strided_slice %5 {offsets = [0, 128], sizes = [16, 128], strides = [1, 1]} : vector<16x512xf32> to vector<16x128xf32>
    %8 = arith.maximumf %6, %7 : vector<16x128xf32>
    %9 = vector.extract_strided_slice %5 {offsets = [0, 256], sizes = [16, 128], strides = [1, 1]} : vector<16x512xf32> to vector<16x128xf32>
    %10 = vector.extract_strided_slice %5 {offsets = [0, 384], sizes = [16, 128], strides = [1, 1]} : vector<16x512xf32> to vector<16x128xf32>
    %11 = arith.maximumf %9, %10 : vector<16x128xf32>
    %12 = arith.maximumf %8, %11 : vector<16x128xf32>
    %c0_5 = arith.constant 0 : index
    %c0_6 = arith.constant 0 : index
    %c0_7 = arith.constant 0 : index
    %13 = vector.load %arg3[%c0_5, %c0_6, %c0_7] : memref<1x16x128xf32, #tpu.memory_space<vmem>>, vector<1x16x128xf32>
    %14 = vector.shape_cast %13 : vector<1x16x128xf32> to vector<16x128xf32>
    %15 = vector.shape_cast %12 : vector<16x128xf32> to vector<1x16x128xf32>
    tpu.vector_store %arg3[%c0_5, %c0_6, %c0_7], %15 {strides = array<i32>} : memref<1x16x128xf32, #tpu.memory_space<vmem>>, vector<1x16x128xf32>,
    return
  }
  func.func @transform_0(%arg0: i32) -> (i32, i32, i32) {
    %c0_i32 = arith.constant 0 : i32
    %c0_i32_0 = arith.constant 0 : i32
    %c0_i32_1 = arith.constant 0 : i32
    return %arg0, %c0_i32, %c0_i32_0 : i32, i32, i32
  }
  func.func @transform_1(%arg0: i32) -> (i32, i32) {
    %c0_i32 = arith.constant 0 : i32
    %c0_i32_0 = arith.constant 0 : i32
    %c0_i32_1 = arith.constant 0 : i32
    return %c0_i32, %c0_i32_0 : i32, i32
  }
  func.func @transform_2(%arg0: i32) -> (i32, i32, i32) {
    %c0_i32 = arith.constant 0 : i32
    %c0_i32_0 = arith.constant 0 : i32
    %c0_i32_1 = arith.constant 0 : i32
    return %arg0, %c0_i32, %c0_i32_0 : i32, i32, i32
  }
}

module attributes {stable_mosaic.version = 11 : i64} {
  func.func @_fc_fused_kernel(%arg0: i32, %arg1: memref<2x2048xf32, #tpu.memory_space<vmem>>, %arg2: memref<2048x32xf32, #tpu.memory_space<vmem>>, %arg3: memref<32x10xf32, #tpu.memory_space<vmem>>, %arg4: memref<2x10xf32, #tpu.memory_space<vmem>>) attributes {dimension_semantics = [#tpu.dimension_semantics<arbitrary>], iteration_bounds = array<i64: 1>, scalar_prefetch = 0 : i64, scratch_operands = 0 : i64, tpu.core_type = #tpu.core_type<tc>, window_params = [{pipeline_mode = #tpu.pipeline_mode<synchronous>, transform_indices = @transform_0, window_bounds = array<i64: 2, 2048>}, {pipeline_mode = #tpu.pipeline_mode<synchronous>, transform_indices = @transform_1, window_bounds = array<i64: 2048, 32>}, {pipeline_mode = #tpu.pipeline_mode<synchronous>, transform_indices = @transform_2, window_bounds = array<i64: 32, 10>}, {pipeline_mode = #tpu.pipeline_mode<synchronous>, transform_indices = @transform_3, window_bounds = array<i64: 2, 10>}]} {
    %c0 = arith.constant 0 : index
    %c0_0 = arith.constant 0 : index
    %0 = vector.load %arg1[%c0, %c0_0] : memref<2x2048xf32, #tpu.memory_space<vmem>>, vector<2x2048xf32>
    %c0_1 = arith.constant 0 : index
    %c0_2 = arith.constant 0 : index
    %1 = vector.load %arg2[%c0_1, %c0_2] : memref<2048x32xf32, #tpu.memory_space<vmem>>, vector<2048x32xf32>
    %cst = arith.constant dense<0.000000e+00> : vector<2x32xf32>
    %2 = tpu.matmul %0, %1, %cst {dimension_numbers = #tpu.dot_dimension_numbers<[1], [0], [0], [1], [0, 0, 1, 1], [], []>} : vector<2x2048xf32>, vector<2048x32xf32>, vector<2x32xf32> -> vector<2x32xf32>
    %cst_3 = arith.constant 0.000000e+00 : f32
    %3 = vector.broadcast %cst_3 : f32 to vector<2x32xf32>
    %4 = arith.maximumf %2, %3 : vector<2x32xf32>
    %c0_4 = arith.constant 0 : index
    %c0_5 = arith.constant 0 : index
    %5 = vector.load %arg3[%c0_4, %c0_5] : memref<32x10xf32, #tpu.memory_space<vmem>>, vector<32x10xf32>
    %cst_6 = arith.constant dense<0.000000e+00> : vector<2x10xf32>
    %6 = tpu.matmul %4, %5, %cst_6 {dimension_numbers = #tpu.dot_dimension_numbers<[1], [0], [0], [1], [0, 0, 1, 1], [], []>} : vector<2x32xf32>, vector<32x10xf32>, vector<2x10xf32> -> vector<2x10xf32>
    %c0_7 = arith.constant 0 : index
    %c0_8 = arith.constant 0 : index
    %7 = vector.load %arg4[%c0_7, %c0_8] : memref<2x10xf32, #tpu.memory_space<vmem>>, vector<2x10xf32>
    tpu.vector_store %arg4[%c0_7, %c0_8], %6 {strides = array<i32>} : memref<2x10xf32, #tpu.memory_space<vmem>>, vector<2x10xf32>,
    return
  }
  func.func @transform_0(%arg0: i32) -> (i32, i32) {
    %c0_i32 = arith.constant 0 : i32
    %c0_i32_0 = arith.constant 0 : i32
    %c0_i32_1 = arith.constant 0 : i32
    return %c0_i32, %c0_i32_0 : i32, i32
  }
  func.func @transform_1(%arg0: i32) -> (i32, i32) {
    %c0_i32 = arith.constant 0 : i32
    %c0_i32_0 = arith.constant 0 : i32
    %c0_i32_1 = arith.constant 0 : i32
    return %c0_i32, %c0_i32_0 : i32, i32
  }
  func.func @transform_2(%arg0: i32) -> (i32, i32) {
    %c0_i32 = arith.constant 0 : i32
    %c0_i32_0 = arith.constant 0 : i32
    %c0_i32_1 = arith.constant 0 : i32
    return %c0_i32, %c0_i32_0 : i32, i32
  }
  func.func @transform_3(%arg0: i32) -> (i32, i32) {
    %c0_i32 = arith.constant 0 : i32
    %c0_i32_0 = arith.constant 0 : i32
    %c0_i32_1 = arith.constant 0 : i32
    return %c0_i32, %c0_i32_0 : i32, i32
  }
}

</mosaic_0001>

<bundles_post_ra>
// kernel: cnn2_forward.3
= control target key start
LH: loop header
LB: loop body
LE: loop exit
PB: predicated region body
PF: predicated region fallthrough
CT: control target
= control target key end

     0   :  { %s756_s9 = smov 0   ;;  %s896_s0 = inlined_call_operand.vmem [shape: f32[2,75,1024], index: 0, kind: input, shape index: {}]   ;;  %s897_s1 = inlined_call_operand.vmem [shape: f32[8,75], index: 1, kind: input, shape index: {}]   ;;  %s898_s2 = inlined_call_operand.vmem [shape: f32[2,8,256], index: 2, kind: output, shape index: {}]  }
   0x1 LB: > { %s609_s10 = sadd.s32 4294967295, %s737_s9   ;;  %p613_p0 = scmp.ge.s32.totalorder %s737_s9, 1  ;;  %s737_s9 = sphi %s756_s9, %s12_s9  }
   0x2   : > { %p112_p1 = scmp.lt.s32.totalorder %s737_s9, 3 }
   0x4   : > { %p113_p2 = pnand %p613_p0, %p112_p1 }
   0x5   : > { %p134_p3 = scmp.lt.s32.totalorder (!%p113_p2), %s609_s10, 1  ;;  %v739_v0 = vmov (!%p113_p2), 0.0   ;;  %vm229_vm0 = vcmask (!%p113_p2), 1042432   ;;  %vm740_vm1 = vmmov (!%p113_p2), 1   ;;  %vm225_vm3 = vcmask (!%p113_p2), 613376  }
   0x6   : > { %116 = sbr.rel (%p113_p2) target bundleno = 282 (0x11a), region = 28  ;;  %318 = vmatprep.mubr.f32.mxu0 (!%p113_p2), %v739_v0  ;;  %389 = vmatprep.mubr.f32.mxu1 (!%p113_p2), %v739_v0  ;;  %vm810_vm2 = vmpackc.low (!%p113_p2), %vm229_vm0, %vm740_vm1 }
   0xd   : > { %s902_s10 = smov (!%p134_p3, %s609_s10), 1 }
   0xe   : > { %s720_s11 = smul.u32 640, %s902_s10  ;;  %s631_s17 = sshll.u32 %s902_s10, 4 }
   0xf   : > { %s143_s20 = scalar_lea.vmem %s898_s2, %s631_s17 }
  0x10   : > { %s772_s14 = scalar_lea.vmem %s896_s0, %s720_s11 }
  0x11   : > { %v146_v1 = vld [vmem:[%s772_s14 + $0x8] sm:$0xff]  ;;  %v148_v3 = vld [vmem:[%s772_s14 + $0x18] sm:$0xff]  ;;  %v145_v6 = vld [vmem:[%s772_s14] sm:$0xff] }
  0x12   : > { %v154_v2 = vld [vmem:[%s772_s14 + $0x48] sm:$0xff]  ;;  %v156_v5 = vld [vmem:[%s772_s14 + $0x58] sm:$0xff]  ;;  %v153_v7 = vld [vmem:[%s772_s14 + $0x40] sm:$0xff] }
  0x13   : > { %v632_v4 = vpack.c.bf16 %v154_v2, %v146_v1  ;;  %v654_v8 = vpack.c.bf16 %v156_v5, %v148_v3  ;;  %v634_v9 = vpack.c.bf16 %v153_v7, %v145_v6  ;;  %v147_v10 = vld [vmem:[%s772_s14 + $0x10] sm:$0xff]  ;;  %v162_v12 = vld [vmem:[%s772_s14 + $0x88] sm:$0xff]  ;;  %v164_v15 = vld [vmem:[%s772_s14 + $0x98] sm:$0xff] }
  0x14   : > { %v155_v11 = vld [vmem:[%s772_s14 + $0x50] sm:$0xff]  ;;  %v170_v14 = vld [vmem:[%s772_s14 + $0xc8] sm:$0xff]  ;;  %v172_v16 = vld [vmem:[%s772_s14 + $0xd8] sm:$0xff] }
  0x15   : > { %633 = vmatprep.subr.bf16.mxu0 %v632_v4  ;;  %v656_v13 = vpack.c.bf16 %v155_v11, %v147_v10  ;;  %655 = vmatprep.subr.bf16.mxu1 %v654_v8  ;;  %v636_v17 = vpack.c.bf16 %v170_v14, %v162_v12  ;;  %v658_v18 = vpack.c.bf16 %v172_v16, %v164_v15  ;;  %v161_v19 = vld [vmem:[%s772_s14 + $0x80] sm:$0xff]  ;;  %v163_v21 = vld [vmem:[%s772_s14 + $0x90] sm:$0xff]  ;;  %v178_v24 = vld [vmem:[%s772_s14 + $0x108] sm:$0xff] }
  0x16   : > { %635 = vmatpush1.bf16.msra.mxu0 %v634_v9  ;;  %v169_v20 = vld [vmem:[%s772_s14 + $0xc0] sm:$0xff]  ;;  %v171_v23 = vld [vmem:[%s772_s14 + $0xd0] sm:$0xff]  ;;  %v186_v25 = vld [vmem:[%s772_s14 + $0x148] sm:$0xff] }
  0x17   : > { %657 = vmatpush1.bf16.msra.mxu1 %v656_v13  ;;  %v638_v22 = vpack.c.bf16 %v169_v20, %v161_v19  ;;  %637 = vmatprep.subr.bf16.mxu0 %v636_v17  ;;  %v660_v26 = vpack.c.bf16 %v171_v23, %v163_v21  ;;  %v640_v27 = vpack.c.bf16 %v186_v25, %v178_v24  ;;  %v180_v28 = vld [vmem:[%s772_s14 + $0x118] sm:$0xff]  ;;  %v177_v30 = vld [vmem:[%s772_s14 + $0x100] sm:$0xff]  ;;  %v179_v33 = vld [vmem:[%s772_s14 + $0x110] sm:$0xff] }
  0x18   : > { %659 = vmatprep.subr.bf16.mxu1 %v658_v18  ;;  %v188_v29 = vld [vmem:[%s772_s14 + $0x158] sm:$0xff]  ;;  %v185_v32 = vld [vmem:[%s772_s14 + $0x140] sm:$0xff]  ;;  %v187_v34 = vld [vmem:[%s772_s14 + $0x150] sm:$0xff] }
  0x19   : > { %v662_v31 = vpack.c.bf16 %v188_v29, %v180_v28  ;;  %v642_v35 = vpack.c.bf16 %v185_v32, %v177_v30  ;;  %v194_v36 = vld [vmem:[%s772_s14 + $0x188] sm:$0xff]  ;;  %v196_v38 = vld [vmem:[%s772_s14 + $0x198] sm:$0xff]  ;;  %v664_v39 = vpack.c.bf16 %v187_v34, %v179_v33  ;;  %v193_v42 = vld [vmem:[%s772_s14 + $0x180] sm:$0xff] }
  0x1a   : > { %639 = vmatpush1.bf16.msra.mxu0 %v638_v22  ;;  %v202_v37 = vld [vmem:[%s772_s14 + $0x1c8] sm:$0xff]  ;;  %v204_v41 = vld [vmem:[%s772_s14 + $0x1d8] sm:$0xff]  ;;  %v201_v43 = vld [vmem:[%s772_s14 + $0x1c0] sm:$0xff] }
  0x1b   : > { %661 = vmatpush1.bf16.msra.mxu1 %v660_v26  ;;  %641 = vmatprep.subr.bf16.mxu0 %v640_v27  ;;  %v644_v40 = vpack.c.bf16 %v202_v37, %v194_v36  ;;  %v666_v44 = vpack.c.bf16 %v204_v41, %v196_v38  ;;  %v195_v45 = vld [vmem:[%s772_s14 + $0x190] sm:$0xff]  ;;  %v210_v47 = vld [vmem:[%s772_s14 + $0x208] sm:$0xff]  ;;  %v212_v49 = vld [vmem:[%s772_s14 + $0x218] sm:$0xff]  ;;  %v646_v51 = vpack.c.bf16 %v201_v43, %v193_v42 }
  0x1c   : > { %663 = vmatprep.subr.bf16.mxu1 %v662_v31  ;;  %v203_v46 = vld [vmem:[%s772_s14 + $0x1d0] sm:$0xff]  ;;  %v218_v48 = vld [vmem:[%s772_s14 + $0x248] sm:$0x7]  ;;  %v220_v50 = vld [vmem:[%s772_s14 + $0x258] sm:$0x7] }
  0x1d   : > { %v668_v53 = vpack.c.bf16 %v203_v46, %v195_v45  ;;  %v648_v54 = vpack.c.bf16 %v218_v48, %v210_v47  ;;  %v209_v55 = vld [vmem:[%s772_s14 + $0x200] sm:$0xff]  ;;  %v211_v57 = vld [vmem:[%s772_s14 + $0x210] sm:$0xff]  ;;  %v670_v58 = vpack.c.bf16 %v220_v50, %v212_v49  ;;  %v150_v60 = vld [vmem:[%s772_s14 + $0x28] sm:$0xff] }
  0x1e   : > { %643 = vmatpush1.bf16.msra.mxu0 %v642_v35  ;;  %v217_v56 = vld [vmem:[%s772_s14 + $0x240] sm:$0x7]  ;;  %v219_v59 = vld [vmem:[%s772_s14 + $0x250] sm:$0x7]  ;;  %v158_v61 = vld [vmem:[%s772_s14 + $0x68] sm:$0xff] }
  0x1f   : > { %665 = vmatpush1.bf16.msra.mxu1 %v664_v39  ;;  %645 = vmatprep.subr.bf16.mxu0 %v644_v40  ;;  %v152_v62 = vld [vmem:[%s772_s14 + $0x38] sm:$0xff]  ;;  %v651_v1 = vpack.c.bf16 %v217_v56, %v209_v55  ;;  %v673_v2 = vpack.c.bf16 %v219_v59, %v211_v57  ;;  %v676_v3 = vpack.c.bf16 %v158_v61, %v150_v60  ;;  %v149_v4 = vld [vmem:[%s772_s14 + $0x20] sm:$0xff]  ;;  %v151_v6 = vld [vmem:[%s772_s14 + $0x30] sm:$0xff] }
  0x20   : > { %667 = vmatprep.subr.bf16.mxu1 %v666_v44  ;;  %v160_v63 = vld [vmem:[%s772_s14 + $0x78] sm:$0xff]  ;;  %v157_v5 = vld [vmem:[%s772_s14 + $0x60] sm:$0xff]  ;;  %v159_v8 = vld [vmem:[%s772_s14 + $0x70] sm:$0xff] }
  0x21   : > { %v698_v7 = vpack.c.bf16 %v160_v63, %v152_v62  ;;  %v166_v9 = vld [vmem:[%s772_s14 + $0xa8] sm:$0xff]  ;;  %v168_v11 = vld [vmem:[%s772_s14 + $0xb8] sm:$0xff]  ;;  %v839_v13 = vld [vmem:[%s897_s1] sm:$0xff]  ;;  %v678_v14 = vpack.c.bf16 %v157_v5, %v149_v4  ;;  %v700_v15 = vpack.c.bf16 %v159_v8, %v151_v6 }
  0x22   : > { %647 = vmatpush1.bf16.msra.mxu0 %v646_v51  ;;  %v174_v10 = vld [vmem:[%s772_s14 + $0xe8] sm:$0xff]  ;;  %v176_v12 = vld [vmem:[%s772_s14 + $0xf8] sm:$0xff]  ;;  %v165_v17 = vld [vmem:[%s772_s14 + $0xa0] sm:$0xff] }
  0x23   : > { %669 = vmatpush1.bf16.msra.mxu1 %v668_v53  ;;  %650 = vmatprep.subr.msk.bf16.mxu0 %vm810_vm2, %v648_v54  ;;  %v680_v16 = vpack.c.bf16 %v174_v10, %v166_v9  ;;  %v173_v18 = vld [vmem:[%s772_s14 + $0xe0] sm:$0xff]  ;;  %v167_v19 = vld [vmem:[%s772_s14 + $0xb0] sm:$0xff]  ;;  %v702_v20 = vpack.c.bf16 %v176_v12, %v168_v11  ;;  %v182_v22 = vld [vmem:[%s772_s14 + $0x128] sm:$0xff] }
  0x24   : > { %672 = vmatprep.subr.msk.bf16.mxu1 %vm810_vm2, %v670_v58  ;;  %v175_v21 = vld [vmem:[%s772_s14 + $0xf0] sm:$0xff]  ;;  %v190_v23 = vld [vmem:[%s772_s14 + $0x168] sm:$0xff]  ;;  %v184_v24 = vld [vmem:[%s772_s14 + $0x138] sm:$0xff]  ;;  %v682_v26 = vpack.c.bf16 %v173_v18, %v165_v17 }
  0x25   : > { %v192_v25 = vld [vmem:[%s772_s14 + $0x178] sm:$0xff]  ;;  %v704_v27 = vpack.c.bf16 %v175_v21, %v167_v19  ;;  %v684_v28 = vpack.c.bf16 %v190_v23, %v182_v22  ;;  %v181_v29 = vld [vmem:[%s772_s14 + $0x120] sm:$0xff]  ;;  %v183_v31 = vld [vmem:[%s772_s14 + $0x130] sm:$0xff] }
  0x26   : > { %653 = vmatpush1.bf16.msk.msra.mxu0 %vm810_vm2, %v651_v1  ;;  %v189_v30 = vld [vmem:[%s772_s14 + $0x160] sm:$0xff]  ;;  %v706_v32 = vpack.c.bf16 %v192_v25, %v184_v24  ;;  %v191_v33 = vld [vmem:[%s772_s14 + $0x170] sm:$0xff]  ;;  %v198_v34 = vld [vmem:[%s772_s14 + $0x1a8] sm:$0xff] }
  0x27   : > { %675 = vmatpush1.bf16.msk.msra.mxu1 %vm810_vm2, %v673_v2  ;;  %677 = vmatprep.subr.bf16.mxu0 %v676_v3  ;;  %v206_v35 = vld [vmem:[%s772_s14 + $0x1e8] sm:$0xff]  ;;  %v200_v36 = vld [vmem:[%s772_s14 + $0x1b8] sm:$0xff]  ;;  %v686_v38 = vpack.c.bf16 %v189_v30, %v181_v29  ;;  %v708_v39 = vpack.c.bf16 %v191_v33, %v183_v31  ;;  %v197_v41 = vld [vmem:[%s772_s14 + $0x1a0] sm:$0xff] }
  0x28   : > { %699 = vmatprep.subr.bf16.mxu1 %v698_v7  ;;  %v208_v37 = vld [vmem:[%s772_s14 + $0x1f8] sm:$0xff]  ;;  %v688_v40 = vpack.c.bf16 %v206_v35, %v198_v34  ;;  %v205_v42 = vld [vmem:[%s772_s14 + $0x1e0] sm:$0xff]  ;;  %v199_v43 = vld [vmem:[%s772_s14 + $0x1b0] sm:$0xff] }
  0x29   : > { %619 = vmatmul.mubr.msk.f32.vlgmr.msra.gmra.mrb[0].mxu0 %vm225_vm3, %v839_v13  ;;  %v710_v44 = vpack.c.bf16 %v208_v37, %v200_v36  ;;  %v207_v45 = vld [vmem:[%s772_s14 + $0x1f0] sm:$0xff]  ;;  %v214_v46 = vld [vmem:[%s772_s14 + $0x228] sm:$0xff]  ;;  %v224_v48 = vld [vmem:[%s772_s14 + $0x278] sm:$0x7]  ;;  %v690_v49 = vpack.c.bf16 %v205_v42, %v197_v41 }
  0x2a   : > { %622 = vmatmul.mubr.msk.f32.vlgmr.msra.gmra.mrb[0].mxu1 %vm225_vm3, %v839_v13  ;;  %679 = vmatpush1.bf16.msra.mxu0 %v678_v14  ;;  %v222_v47 = vld [vmem:[%s772_s14 + $0x268] sm:$0x7]  ;;  %v712_v50 = vpack.c.bf16 %v207_v45, %v199_v43  ;;  %v213_v53 = vld [vmem:[%s772_s14 + $0x220] sm:$0xff]  ;;  %v215_v56 = vld [vmem:[%s772_s14 + $0x230] sm:$0xff] }
  0x2b   : > { %701 = vmatpush1.bf16.msra.mxu1 %v700_v15  ;;  %681 = vmatprep.subr.bf16.mxu0 %v680_v16  ;;  %v692_v51 = vpack.c.bf16 %v222_v47, %v214_v46  ;;  %v221_v54 = vld [vmem:[%s772_s14 + $0x260] sm:$0x7]  ;;  %v223_v57 = vld [vmem:[%s772_s14 + $0x270] sm:$0x7] }
  0x2c   : > { %703 = vmatprep.subr.bf16.mxu1 %v702_v20  ;;  %460 = vmatprep.mubr.f32.mxu0 %v739_v0  ;;  %v695_v58 = vpack.c.bf16 %v221_v54, %v213_v53  ;;  %v717_v59 = vpack.c.bf16 %v223_v57, %v215_v56 }
  0x2d   : > { %531 = vmatprep.mubr.f32.mxu1 %v739_v0  ;;  %v216_v0 = vld [vmem:[%s772_s14 + $0x238] sm:$0xff] }
  0x2e   : > { %683 = vmatpush1.bf16.msra.mxu0 %v682_v26  ;;  %v714_v55 = vpack.c.bf16 %v224_v48, %v216_v0 }
  0x2f   : > { %705 = vmatpush1.bf16.msra.mxu1 %v704_v27  ;;  %685 = vmatprep.subr.bf16.mxu0 %v684_v28 }
  0x30   : > { %707 = vmatprep.subr.bf16.mxu1 %v706_v32 }
  0x32   : > { %687 = vmatpush1.bf16.msra.mxu0 %v686_v38 }
  0x33   : > { %709 = vmatpush1.bf16.msra.mxu1 %v708_v39  ;;  %689 = vmatprep.subr.bf16.mxu0 %v688_v40 }
  0x34   : > { %711 = vmatprep.subr.bf16.mxu1 %v710_v44 }
  0x36   : > { %691 = vmatpush1.bf16.msra.mxu0 %v690_v49 }
  0x37   : > { %713 = vmatpush1.bf16.msra.mxu1 %v712_v50  ;;  %694 = vmatprep.subr.msk.bf16.mxu0 %vm810_vm2, %v692_v51 }
  0x38   : > { %716 = vmatprep.subr.msk.bf16.mxu1 %vm810_vm2, %v714_v55 }
  0x3a   : > { %697 = vmatpush1.bf16.msk.msra.mxu0 %vm810_vm2, %v695_v58 }
  0x3b   : > { %719 = vmatpush1.bf16.msk.msra.mxu1 %vm810_vm2, %v717_v59 }
  0x3d   : > { %625 = vmatmul.mubr.msk.f32.vlgmr.msra.gmra.mrb[2].mxu0 %vm225_vm3, %v839_v13 }
  0x3e   : > { %628 = vmatmul.mubr.msk.f32.vlgmr.msra.gmra.mrb[2].mxu1 %vm225_vm3, %v839_v13 }
  0xfc   : > { %v320_v60 = vpop.f32.mrb[0].mxu0 }
  0xfd   : > { %v538_v61 = vmax.f32 %v320_v60, 0.0  ;;  %v391_v62 = vpop.f32.mrb[0].mxu1  ;;  %v322_v63 = vpop.f32.mrb[1].mxu0 }
  0xfe   : > { %v540_v1 = vmax.f32 %v391_v62, 0.0  ;;  %v539_v2 = vmax.f32 %v322_v63, 0.0  ;;  %v393_v3 = vpop.f32.mrb[1].mxu1 }
  0xff   : > { %v541_v4 = vmax.f32 %v393_v3, 0.0 }
 0x100   : > { %v546_v5 = vmax.f32 %v538_v61, %v540_v1 }
 0x101   : > { %v547_v6 = vmax.f32 %v539_v2, %v541_v4 }
 0x110   : > { %v462_v7 = vpop.f32.mrb[2].mxu0 }
 0x111   : > { %v542_v52 = vmax.f32 %v462_v7, 0.0  ;;  %v533_v8 = vpop.f32.mrb[2].mxu1  ;;  %v464_v9 = vpop.f32.mrb[3].mxu0 }
 0x112   : > { %v544_v10 = vmax.f32 %v533_v8, 0.0  ;;  %v543_v11 = vmax.f32 %v464_v9, 0.0  ;;  %v535_v12 = vpop.f32.mrb[3].mxu1 }
 0x113   : > { %v545_v14 = vmax.f32 %v535_v12, 0.0 }
 0x114   : > { %v548_v13 = vmax.f32 %v542_v52, %v544_v10 }
 0x115   : > { %v549_v15 = vmax.f32 %v543_v11, %v545_v14 }
 0x116   : > { %v550_v16 = vmax.f32 %v546_v5, %v548_v13 }
 0x117   : > { %v551_v17 = vmax.f32 %v547_v6, %v549_v15 }
 0x118   : > { %552 = vst [vmem:[%s143_s20] sm:$0xff] %v550_v16 }
 0x119   : > { %553 = vst [vmem:[%s143_s20 + $0x8] sm:$0xff] %v551_v17 }
 0x11a PF: > { %s12_s9 = sadd.s32 1, %s737_s9  }
 0x11b   : > { %p9_p4 = scmp.ge.s32.totalorder %s12_s9, 4  }
 0x11d   :  { %11 = sbr.rel (!%p9_p4) target bundleno = 1 (0x1), region = 58 }

// kernel: cnn2_forward.4
= control target key start
LH: loop header
LB: loop body
LE: loop exit
PB: predicated region body
PF: predicated region fallthrough
CT: control target
= control target key end

     0   :  { %s623_s9 = smov 0   ;;  %s762_s0 = inlined_call_operand.vmem [shape: f32[2,200,512], index: 0, kind: input, shape index: {}]   ;;  %s763_s1 = inlined_call_operand.vmem [shape: f32[16,200], index: 1, kind: input, shape index: {}]   ;;  %s764_s2 = inlined_call_operand.vmem [shape: f32[2,16,128], index: 2, kind: output, shape index: {}]  }
   0x1 LB: > { %s480_s10 = sadd.s32 4294967295, %s606_s9   ;;  %p484_p0 = scmp.ge.s32.totalorder %s606_s9, 1  ;;  %s606_s9 = sphi %s623_s9, %s12_s9  }
   0x2   : > { %p112_p1 = scmp.lt.s32.totalorder %s606_s9, 3 }
   0x4   : > { %p113_p2 = pnand %p484_p0, %p112_p1 }
   0x5   : > { %p134_p3 = scmp.lt.s32.totalorder (!%p113_p2), %s480_s10, 1  ;;  %v145_v0 = vld [vmem:[%s763_s1 + $0x8] sm:$0xff] (!%p113_p2)  ;;  %vm248_vm0 = vcmask (!%p113_p2), 588800  }
   0x6   : > { %116 = sbr.rel (%p113_p2) target bundleno = 296 (0x128), region = 28  ;;  %488 = vmatprep.mubr.msk.f32.mxu0 (!%p113_p2), %vm248_vm0, %v145_v0  ;;  %490 = vmatprep.mubr.msk.f32.mxu1 (!%p113_p2), %vm248_vm0, %v145_v0 }
   0xd   : > { %s766_s10 = smov (!%p134_p3, %s480_s10), 1 }
   0xe   : > { %s591_s13 = smul.u32 800, %s766_s10  ;;  %s494_s23 = sshll.u32 %s766_s10, 4 }
   0xf   : > { %s143_s26 = scalar_lea.vmem %s764_s2, %s494_s23 }
  0x10   : > { %s642_s16 = scalar_lea.vmem %s762_s0, %s591_s13 }
  0x11   : > { %v149_v1 = vld [vmem:[%s642_s16 + $0x8] sm:$0xff]  ;;  %v151_v3 = vld [vmem:[%s642_s16 + $0x18] sm:$0xff]  ;;  %v148_v6 = vld [vmem:[%s642_s16] sm:$0xff] }
  0x12   : > { %v153_v2 = vld [vmem:[%s642_s16 + $0x28] sm:$0xff]  ;;  %v155_v5 = vld [vmem:[%s642_s16 + $0x38] sm:$0xff]  ;;  %v152_v7 = vld [vmem:[%s642_s16 + $0x20] sm:$0xff] }
  0x13   : > { %v495_v4 = vpack.c.bf16 %v153_v2, %v149_v1  ;;  %v543_v8 = vpack.c.bf16 %v155_v5, %v151_v3  ;;  %v497_v9 = vpack.c.bf16 %v152_v7, %v148_v6  ;;  %v150_v10 = vld [vmem:[%s642_s16 + $0x10] sm:$0xff]  ;;  %v157_v12 = vld [vmem:[%s642_s16 + $0x48] sm:$0xff]  ;;  %v159_v15 = vld [vmem:[%s642_s16 + $0x58] sm:$0xff] }
  0x14   : > { %v154_v11 = vld [vmem:[%s642_s16 + $0x30] sm:$0xff]  ;;  %v161_v14 = vld [vmem:[%s642_s16 + $0x68] sm:$0xff]  ;;  %v163_v16 = vld [vmem:[%s642_s16 + $0x78] sm:$0xff] }
  0x15   : > { %496 = vmatprep.subr.bf16.mxu0 %v495_v4  ;;  %v545_v13 = vpack.c.bf16 %v154_v11, %v150_v10  ;;  %544 = vmatprep.subr.bf16.mxu1 %v543_v8  ;;  %v499_v17 = vpack.c.bf16 %v161_v14, %v157_v12  ;;  %v547_v18 = vpack.c.bf16 %v163_v16, %v159_v15  ;;  %v156_v19 = vld [vmem:[%s642_s16 + $0x40] sm:$0xff]  ;;  %v158_v21 = vld [vmem:[%s642_s16 + $0x50] sm:$0xff]  ;;  %v165_v24 = vld [vmem:[%s642_s16 + $0x88] sm:$0xff] }
  0x16   : > { %498 = vmatpush1.bf16.msra.mxu0 %v497_v9  ;;  %v160_v20 = vld [vmem:[%s642_s16 + $0x60] sm:$0xff]  ;;  %v162_v23 = vld [vmem:[%s642_s16 + $0x70] sm:$0xff]  ;;  %v169_v25 = vld [vmem:[%s642_s16 + $0xa8] sm:$0xff] }
  0x17   : > { %546 = vmatpush1.bf16.msra.mxu1 %v545_v13  ;;  %v501_v22 = vpack.c.bf16 %v160_v20, %v156_v19  ;;  %500 = vmatprep.subr.bf16.mxu0 %v499_v17  ;;  %v549_v26 = vpack.c.bf16 %v162_v23, %v158_v21  ;;  %v503_v27 = vpack.c.bf16 %v169_v25, %v165_v24  ;;  %v167_v28 = vld [vmem:[%s642_s16 + $0x98] sm:$0xff]  ;;  %v164_v30 = vld [vmem:[%s642_s16 + $0x80] sm:$0xff]  ;;  %v166_v33 = vld [vmem:[%s642_s16 + $0x90] sm:$0xff] }
  0x18   : > { %548 = vmatprep.subr.bf16.mxu1 %v547_v18  ;;  %v171_v29 = vld [vmem:[%s642_s16 + $0xb8] sm:$0xff]  ;;  %v168_v32 = vld [vmem:[%s642_s16 + $0xa0] sm:$0xff]  ;;  %v170_v34 = vld [vmem:[%s642_s16 + $0xb0] sm:$0xff] }
  0x19   : > { %v551_v31 = vpack.c.bf16 %v171_v29, %v167_v28  ;;  %v505_v35 = vpack.c.bf16 %v168_v32, %v164_v30  ;;  %v173_v36 = vld [vmem:[%s642_s16 + $0xc8] sm:$0xff]  ;;  %v175_v38 = vld [vmem:[%s642_s16 + $0xd8] sm:$0xff]  ;;  %v553_v39 = vpack.c.bf16 %v170_v34, %v166_v33  ;;  %v172_v42 = vld [vmem:[%s642_s16 + $0xc0] sm:$0xff] }
  0x1a   : > { %502 = vmatpush1.bf16.msra.mxu0 %v501_v22  ;;  %v177_v37 = vld [vmem:[%s642_s16 + $0xe8] sm:$0xff]  ;;  %v179_v41 = vld [vmem:[%s642_s16 + $0xf8] sm:$0xff]  ;;  %v176_v43 = vld [vmem:[%s642_s16 + $0xe0] sm:$0xff] }
  0x1b   : > { %550 = vmatpush1.bf16.msra.mxu1 %v549_v26  ;;  %504 = vmatprep.subr.bf16.mxu0 %v503_v27  ;;  %v507_v40 = vpack.c.bf16 %v177_v37, %v173_v36  ;;  %v555_v44 = vpack.c.bf16 %v179_v41, %v175_v38  ;;  %v174_v45 = vld [vmem:[%s642_s16 + $0xd0] sm:$0xff]  ;;  %v181_v47 = vld [vmem:[%s642_s16 + $0x108] sm:$0xff]  ;;  %v183_v49 = vld [vmem:[%s642_s16 + $0x118] sm:$0xff]  ;;  %v509_v51 = vpack.c.bf16 %v176_v43, %v172_v42 }
  0x1c   : > { %552 = vmatprep.subr.bf16.mxu1 %v551_v31  ;;  %v178_v46 = vld [vmem:[%s642_s16 + $0xf0] sm:$0xff]  ;;  %v185_v48 = vld [vmem:[%s642_s16 + $0x128] sm:$0xff]  ;;  %v187_v50 = vld [vmem:[%s642_s16 + $0x138] sm:$0xff] }
  0x1d   : > { %v557_v52 = vpack.c.bf16 %v178_v46, %v174_v45  ;;  %v511_v53 = vpack.c.bf16 %v185_v48, %v181_v47  ;;  %v180_v54 = vld [vmem:[%s642_s16 + $0x100] sm:$0xff]  ;;  %v182_v56 = vld [vmem:[%s642_s16 + $0x110] sm:$0xff]  ;;  %v559_v57 = vpack.c.bf16 %v187_v50, %v183_v49  ;;  %v189_v59 = vld [vmem:[%s642_s16 + $0x148] sm:$0xff] }
  0x1e   : > { %506 = vmatpush1.bf16.msra.mxu0 %v505_v35  ;;  %v184_v55 = vld [vmem:[%s642_s16 + $0x120] sm:$0xff]  ;;  %v186_v58 = vld [vmem:[%s642_s16 + $0x130] sm:$0xff]  ;;  %v193_v60 = vld [vmem:[%s642_s16 + $0x168] sm:$0xff] }
  0x1f   : > { %554 = vmatpush1.bf16.msra.mxu1 %v553_v39  ;;  %508 = vmatprep.subr.bf16.mxu0 %v507_v40  ;;  %v191_v61 = vld [vmem:[%s642_s16 + $0x158] sm:$0xff]  ;;  %v513_v63 = vpack.c.bf16 %v184_v55, %v180_v54  ;;  %v561_v0 = vpack.c.bf16 %v186_v58, %v182_v56  ;;  %v515_v1 = vpack.c.bf16 %v193_v60, %v189_v59  ;;  %v188_v2 = vld [vmem:[%s642_s16 + $0x140] sm:$0xff]  ;;  %v190_v4 = vld [vmem:[%s642_s16 + $0x150] sm:$0xff] }
  0x20   : > { %556 = vmatprep.subr.bf16.mxu1 %v555_v44  ;;  %v195_v62 = vld [vmem:[%s642_s16 + $0x178] sm:$0xff]  ;;  %v192_v3 = vld [vmem:[%s642_s16 + $0x160] sm:$0xff]  ;;  %v194_v6 = vld [vmem:[%s642_s16 + $0x170] sm:$0xff] }
  0x21   : > { %v563_v5 = vpack.c.bf16 %v195_v62, %v191_v61  ;;  %v197_v7 = vld [vmem:[%s642_s16 + $0x188] sm:$0xff]  ;;  %v199_v9 = vld [vmem:[%s642_s16 + $0x198] sm:$0xff]  ;;  %v517_v11 = vpack.c.bf16 %v192_v3, %v188_v2  ;;  %v565_v12 = vpack.c.bf16 %v194_v6, %v190_v4  ;;  %v196_v14 = vld [vmem:[%s642_s16 + $0x180] sm:$0xff] }
  0x22   : > { %510 = vmatpush1.bf16.msra.mxu0 %v509_v51  ;;  %v201_v8 = vld [vmem:[%s642_s16 + $0x1a8] sm:$0xff]  ;;  %v203_v10 = vld [vmem:[%s642_s16 + $0x1b8] sm:$0xff]  ;;  %v200_v15 = vld [vmem:[%s642_s16 + $0x1a0] sm:$0xff] }
  0x23   : > { %558 = vmatpush1.bf16.msra.mxu1 %v557_v52  ;;  %512 = vmatprep.subr.bf16.mxu0 %v511_v53  ;;  %v519_v13 = vpack.c.bf16 %v201_v8, %v197_v7  ;;  %v198_v16 = vld [vmem:[%s642_s16 + $0x190] sm:$0xff]  ;;  %v567_v17 = vpack.c.bf16 %v203_v10, %v199_v9  ;;  %v205_v19 = vld [vmem:[%s642_s16 + $0x1c8] sm:$0xff]  ;;  %v207_v21 = vld [vmem:[%s642_s16 + $0x1d8] sm:$0xff]  ;;  %v521_v23 = vpack.c.bf16 %v200_v15, %v196_v14 }
  0x24   : > { %560 = vmatprep.subr.bf16.mxu1 %v559_v57  ;;  %v202_v18 = vld [vmem:[%s642_s16 + $0x1b0] sm:$0xff]  ;;  %v209_v20 = vld [vmem:[%s642_s16 + $0x1e8] sm:$0xff]  ;;  %v211_v22 = vld [vmem:[%s642_s16 + $0x1f8] sm:$0xff] }
  0x25   : > { %v569_v24 = vpack.c.bf16 %v202_v18, %v198_v16  ;;  %v523_v25 = vpack.c.bf16 %v209_v20, %v205_v19  ;;  %v204_v26 = vld [vmem:[%s642_s16 + $0x1c0] sm:$0xff]  ;;  %v206_v28 = vld [vmem:[%s642_s16 + $0x1d0] sm:$0xff]  ;;  %v571_v29 = vpack.c.bf16 %v211_v22, %v207_v21  ;;  %v213_v31 = vld [vmem:[%s642_s16 + $0x208] sm:$0xff] }
  0x26   : > { %514 = vmatpush1.bf16.msra.mxu0 %v513_v63  ;;  %v208_v27 = vld [vmem:[%s642_s16 + $0x1e0] sm:$0xff]  ;;  %v210_v30 = vld [vmem:[%s642_s16 + $0x1f0] sm:$0xff]  ;;  %v217_v32 = vld [vmem:[%s642_s16 + $0x228] sm:$0xff] }
  0x27   : > { %562 = vmatpush1.bf16.msra.mxu1 %v561_v0  ;;  %516 = vmatprep.subr.bf16.mxu0 %v515_v1  ;;  %v215_v33 = vld [vmem:[%s642_s16 + $0x218] sm:$0xff]  ;;  %v525_v35 = vpack.c.bf16 %v208_v27, %v204_v26  ;;  %v573_v36 = vpack.c.bf16 %v210_v30, %v206_v28  ;;  %v527_v37 = vpack.c.bf16 %v217_v32, %v213_v31  ;;  %v212_v38 = vld [vmem:[%s642_s16 + $0x200] sm:$0xff]  ;;  %v214_v40 = vld [vmem:[%s642_s16 + $0x210] sm:$0xff] }
  0x28   : > { %564 = vmatprep.subr.bf16.mxu1 %v563_v5  ;;  %v219_v34 = vld [vmem:[%s642_s16 + $0x238] sm:$0xff]  ;;  %v216_v39 = vld [vmem:[%s642_s16 + $0x220] sm:$0xff]  ;;  %v218_v42 = vld [vmem:[%s642_s16 + $0x230] sm:$0xff] }
  0x29   : > { %v575_v41 = vpack.c.bf16 %v219_v34, %v215_v33  ;;  %v221_v43 = vld [vmem:[%s642_s16 + $0x248] sm:$0xff]  ;;  %v223_v45 = vld [vmem:[%s642_s16 + $0x258] sm:$0xff]  ;;  %v529_v47 = vpack.c.bf16 %v216_v39, %v212_v38  ;;  %v577_v48 = vpack.c.bf16 %v218_v42, %v214_v40  ;;  %v220_v50 = vld [vmem:[%s642_s16 + $0x240] sm:$0xff] }
  0x2a   : > { %518 = vmatpush1.bf16.msra.mxu0 %v517_v11  ;;  %v225_v44 = vld [vmem:[%s642_s16 + $0x268] sm:$0xff]  ;;  %v227_v46 = vld [vmem:[%s642_s16 + $0x278] sm:$0xff]  ;;  %v224_v51 = vld [vmem:[%s642_s16 + $0x260] sm:$0xff] }
  0x2b   : > { %566 = vmatpush1.bf16.msra.mxu1 %v565_v12  ;;  %520 = vmatprep.subr.bf16.mxu0 %v519_v13  ;;  %v531_v49 = vpack.c.bf16 %v225_v44, %v221_v43  ;;  %v222_v52 = vld [vmem:[%s642_s16 + $0x250] sm:$0xff]  ;;  %v579_v53 = vpack.c.bf16 %v227_v46, %v223_v45  ;;  %v229_v55 = vld [vmem:[%s642_s16 + $0x288] sm:$0xff]  ;;  %v231_v57 = vld [vmem:[%s642_s16 + $0x298] sm:$0xff]  ;;  %v533_v59 = vpack.c.bf16 %v224_v51, %v220_v50 }
  0x2c   : > { %568 = vmatprep.subr.bf16.mxu1 %v567_v17  ;;  %v226_v54 = vld [vmem:[%s642_s16 + $0x270] sm:$0xff]  ;;  %v233_v56 = vld [vmem:[%s642_s16 + $0x2a8] sm:$0xff]  ;;  %v235_v58 = vld [vmem:[%s642_s16 + $0x2b8] sm:$0xff] }
  0x2d   : > { %v581_v60 = vpack.c.bf16 %v226_v54, %v222_v52  ;;  %v535_v61 = vpack.c.bf16 %v233_v56, %v229_v55  ;;  %v228_v62 = vld [vmem:[%s642_s16 + $0x280] sm:$0xff]  ;;  %v230_v0 = vld [vmem:[%s642_s16 + $0x290] sm:$0xff]  ;;  %v583_v1 = vpack.c.bf16 %v235_v58, %v231_v57  ;;  %v237_v3 = vld [vmem:[%s642_s16 + $0x2c8] sm:$0xff] }
  0x2e   : > { %522 = vmatpush1.bf16.msra.mxu0 %v521_v23  ;;  %v232_v63 = vld [vmem:[%s642_s16 + $0x2a0] sm:$0xff]  ;;  %v234_v2 = vld [vmem:[%s642_s16 + $0x2b0] sm:$0xff]  ;;  %v241_v4 = vld [vmem:[%s642_s16 + $0x2e8] sm:$0xff] }
  0x2f   : > { %570 = vmatpush1.bf16.msra.mxu1 %v569_v24  ;;  %524 = vmatprep.subr.bf16.mxu0 %v523_v25  ;;  %v239_v5 = vld [vmem:[%s642_s16 + $0x2d8] sm:$0xff]  ;;  %v537_v7 = vpack.c.bf16 %v232_v63, %v228_v62  ;;  %v585_v8 = vpack.c.bf16 %v234_v2, %v230_v0  ;;  %v539_v9 = vpack.c.bf16 %v241_v4, %v237_v3  ;;  %v236_v10 = vld [vmem:[%s642_s16 + $0x2c0] sm:$0xff]  ;;  %v238_v13 = vld [vmem:[%s642_s16 + $0x2d0] sm:$0xff] }
  0x30   : > { %572 = vmatprep.subr.bf16.mxu1 %v571_v29  ;;  %v243_v6 = vld [vmem:[%s642_s16 + $0x2f8] sm:$0xff]  ;;  %v240_v11 = vld [vmem:[%s642_s16 + $0x2e0] sm:$0xff]  ;;  %v242_v14 = vld [vmem:[%s642_s16 + $0x2f0] sm:$0xff] }
  0x31   : > { %v587_v12 = vpack.c.bf16 %v243_v6, %v239_v5  ;;  %v541_v15 = vpack.c.bf16 %v240_v11, %v236_v10  ;;  %v589_v16 = vpack.c.bf16 %v242_v14, %v238_v13  ;;  %v245_v17 = vld [vmem:[%s642_s16 + $0x308] sm:$0xff]  ;;  %v247_v18 = vld [vmem:[%s642_s16 + $0x318] sm:$0xff]  ;;  %v244_v19 = vld [vmem:[%s642_s16 + $0x300] sm:$0xff] }
  0x32   : > { %526 = vmatpush1.bf16.msra.mxu0 %v525_v35  ;;  %v246_v20 = vld [vmem:[%s642_s16 + $0x310] sm:$0xff]  ;;  %v144_v21 = vld [vmem:[%s763_s1] sm:$0xff]  ;;  %v147_v22 = vld [vmem:[%s763_s1 + $0x18] sm:$0xff] }
  0x33   : > { %574 = vmatpush1.bf16.msra.mxu1 %v573_v36  ;;  %528 = vmatprep.subr.bf16.mxu0 %v527_v37  ;;  %v146_v23 = vld [vmem:[%s763_s1 + $0x10] sm:$0xff] }
  0x34   : > { %576 = vmatprep.subr.bf16.mxu1 %v575_v41 }
  0x36   : > { %530 = vmatpush1.bf16.msra.mxu0 %v529_v47 }
  0x37   : > { %578 = vmatpush1.bf16.msra.mxu1 %v577_v48  ;;  %532 = vmatprep.subr.bf16.mxu0 %v531_v49 }
  0x38   : > { %580 = vmatprep.subr.bf16.mxu1 %v579_v53 }
  0x3a   : > { %534 = vmatpush1.bf16.msra.mxu0 %v533_v59 }
  0x3b   : > { %582 = vmatpush1.bf16.msra.mxu1 %v581_v60  ;;  %536 = vmatprep.subr.bf16.mxu0 %v535_v61 }
  0x3c   : > { %584 = vmatprep.subr.bf16.mxu1 %v583_v1 }
  0x3e   : > { %538 = vmatpush1.bf16.msra.mxu0 %v537_v7 }
  0x3f   : > { %586 = vmatpush1.bf16.msra.mxu1 %v585_v8  ;;  %540 = vmatprep.subr.bf16.mxu0 %v539_v9 }
  0x40   : > { %588 = vmatprep.subr.bf16.mxu1 %v587_v12 }
  0x42   : > { %542 = vmatpush1.bf16.msra.mxu0 %v541_v15 }
  0x43   : > { %590 = vmatpush1.bf16.msra.mxu1 %v589_v16  ;;  %303 = vmatprep.subr.mxu0 %v245_v17 }
  0x44   : > { %380 = vmatprep.subr.mxu1 %v247_v18 }
  0x46   : > { %304 = vmatpush1.msra.mxu0 %v244_v19 }
  0x47   : > { %381 = vmatpush1.msra.mxu1 %v246_v20  ;;  %320 = vmatmul.mubr.f32.vlgmr.msra.gmra.mrb[0].mxu0 %v144_v21 }
  0x48   : > { %397 = vmatmul.mubr.f32.vlgmr.msra.gmra.mrb[0].mxu1 %v144_v21  ;;  %489 = vmatprep.mubr.msk.f32.mxu0 %vm248_vm0, %v147_v22 }
  0x49   : > { %491 = vmatprep.mubr.msk.f32.mxu1 %vm248_vm0, %v147_v22 }
  0x4b   : > { %326 = vmatmul.mubr.f32.gmra.mrb[2].mxu0 %v146_v23 }
  0x4c   : > { %403 = vmatmul.mubr.f32.gmra.mrb[2].mxu1 %v146_v23 }
 0x11a   : > { %v321_v24 = vpop.f32.mrb[0].mxu0 }
 0x11b   : > { %v409_v25 = vmax.f32 %v321_v24, 0.0  ;;  %v398_v26 = vpop.f32.mrb[0].mxu1  ;;  %v323_v27 = vpop.f32.mrb[1].mxu0 }
 0x11c   : > { %v411_v28 = vmax.f32 %v398_v26, 0.0  ;;  %v410_v29 = vmax.f32 %v323_v27, 0.0  ;;  %v400_v30 = vpop.f32.mrb[1].mxu1 }
 0x11d   : > { %v412_v31 = vmax.f32 %v400_v30, 0.0 }
 0x11e   : > { %v417_v32 = vmax.f32 %v409_v25, %v410_v29  ;;  %v327_v33 = vpop.f32.mrb[2].mxu0 }
 0x11f   : > { %v419_v34 = vmax.f32 %v411_v28, %v412_v31  ;;  %v413_v35 = vmax.f32 %v327_v33, 0.0  ;;  %v404_v36 = vpop.f32.mrb[2].mxu1  ;;  %v329_v37 = vpop.f32.mrb[3].mxu0 }
 0x120   : > { %v415_v38 = vmax.f32 %v404_v36, 0.0  ;;  %v414_v39 = vmax.f32 %v329_v37, 0.0  ;;  %v406_v40 = vpop.f32.mrb[3].mxu1 }
 0x121   : > { %v421_v41 = vmax.f32 %v417_v32, %v419_v34  ;;  %v416_v42 = vmax.f32 %v406_v40, 0.0 }
 0x122   : > { %v418_v43 = vmax.f32 %v413_v35, %v414_v39 }
 0x123   : > { %423 = vst [vmem:[%s143_s26] sm:$0xff] %v421_v41  ;;  %v420_v44 = vmax.f32 %v415_v38, %v416_v42 }
 0x125   : > { %v422_v45 = vmax.f32 %v418_v43, %v420_v44 }
 0x127   : > { %424 = vst [vmem:[%s143_s26 + $0x8] sm:$0xff] %v422_v45 }
 0x128 PF: > { %s12_s9 = sadd.s32 1, %s606_s9  }
 0x129   : > { %p9_p4 = scmp.ge.s32.totalorder %s12_s9, 4  }
 0x12b   :  { %11 = sbr.rel (!%p9_p4) target bundleno = 1 (0x1), region = 58 }

// kernel: cnn2_forward.5
= control target key start
LH: loop header
LB: loop body
LE: loop exit
PB: predicated region body
PF: predicated region fallthrough
CT: control target
= control target key end

     0   :  { %v1610_v47 = vmov 1983009808   ;;  %v283_v49 = vlaneseq  ;;  %s2479_s0 = inlined_call_operand.vmem [shape: f32[2,2048], index: 0, kind: input, shape index: {}]   ;;  %s2480_s1 = inlined_call_operand.vmem [shape: f32[2048,32], index: 1, kind: input, shape index: {}]   ;;  %s2481_s2 = inlined_call_operand.vmem [shape: f32[32,10], index: 2, kind: input, shape index: {}]   ;;  %s2482_s3 = inlined_call_operand.hbm [shape: f32[2,10], index: 3, kind: output, shape index: {}]  }
   0x1   :  { %v35_v0 = vld [vmem:[%s2480_s1 + $0x80] sm:$0xff]  ;;  %v36_v1 = vld [vmem:[%s2480_s1 + $0x88] sm:$0xff]  ;;  %v37_v11 = vld [vmem:[%s2480_s1 + $0x90] sm:$0xff]  ;;  %v281_v48 = vunpack.c.l.s4 %v1610_v47 }
   0x2   :  { %v67_v2 = vld [vmem:[%s2480_s1 + $0x180] sm:$0xff]  ;;  %v1315_v3 = vpack.c.bf16 %v36_v1, %v35_v0  ;;  %v68_v4 = vld [vmem:[%s2480_s1 + $0x188] sm:$0xff]  ;;  %v38_v13 = vld [vmem:[%s2480_s1 + $0x98] sm:$0xff]  ;;  %v284_v0 = vshrl.u32 %v283_v49, 7 }
   0x3   :  { %v19_v5 = vld [vmem:[%s2480_s1] sm:$0xff]  ;;  %v20_v6 = vld [vmem:[%s2480_s1 + $0x8] sm:$0xff]  ;;  %v1347_v7 = vpack.c.bf16 %v68_v4, %v67_v2  ;;  %v69_v14 = vld [vmem:[%s2480_s1 + $0x190] sm:$0xff]  ;;  %v1319_v16 = vpack.c.bf16 %v38_v13, %v37_v11  ;;  %v282_v63 = vunpack.c.0.s8 %v281_v48 }
   0x4   :  { %v1317_v8 = vpack.c.bf16 %v20_v6, %v19_v5  ;;  %v51_v9 = vld [vmem:[%s2480_s1 + $0x100] sm:$0xff]  ;;  %v52_v10 = vld [vmem:[%s2480_s1 + $0x108] sm:$0xff]  ;;  %1316 = vmatprep.subr.bf16.mxu0 %v1315_v3  ;;  %v70_v15 = vld [vmem:[%s2480_s1 + $0x198] sm:$0xff] }
   0x5   :  { %v1349_v12 = vpack.c.bf16 %v52_v10, %v51_v9  ;;  %1348 = vmatprep.subr.bf16.mxu1 %v1347_v7  ;;  %v1351_v17 = vpack.c.bf16 %v70_v15, %v69_v14  ;;  %v21_v18 = vld [vmem:[%s2480_s1 + $0x10] sm:$0xff]  ;;  %v22_v19 = vld [vmem:[%s2480_s1 + $0x18] sm:$0xff]  ;;  %v39_v23 = vld [vmem:[%s2480_s1 + $0xa0] sm:$0xff]  ;;  %v1785_v13 = vsub.s32 %v282_v63, %v284_v0 }
   0x6   :  { %1318 = vmatpush3.bf16.msra.mxu0 %v1317_v8  ;;  %v53_v20 = vld [vmem:[%s2480_s1 + $0x110] sm:$0xff]  ;;  %v1321_v21 = vpack.c.bf16 %v22_v19, %v21_v18  ;;  %v54_v22 = vld [vmem:[%s2480_s1 + $0x118] sm:$0xff]  ;;  %v40_v24 = vld [vmem:[%s2480_s1 + $0xa8] sm:$0xff] }
   0x7   :  { %1350 = vmatpush3.bf16.msra.mxu1 %v1349_v12  ;;  %1320 = vmatprep.subr.bf16.mxu0 %v1319_v16  ;;  %v1353_v25 = vpack.c.bf16 %v54_v22, %v53_v20  ;;  %v1323_v26 = vpack.c.bf16 %v40_v24, %v39_v23  ;;  %v71_v27 = vld [vmem:[%s2480_s1 + $0x1a0] sm:$0xff]  ;;  %v72_v28 = vld [vmem:[%s2480_s1 + $0x1a8] sm:$0xff]  ;;  %v41_v35 = vld [vmem:[%s2480_s1 + $0xb0] sm:$0xff] }
   0x8   :  { %1352 = vmatprep.subr.bf16.mxu1 %v1351_v17  ;;  %v23_v29 = vld [vmem:[%s2480_s1 + $0x20] sm:$0xff]  ;;  %v1355_v30 = vpack.c.bf16 %v72_v28, %v71_v27  ;;  %v24_v31 = vld [vmem:[%s2480_s1 + $0x28] sm:$0xff]  ;;  %v42_v36 = vld [vmem:[%s2480_s1 + $0xb8] sm:$0xff] }
   0x9   :  { %v55_v32 = vld [vmem:[%s2480_s1 + $0x120] sm:$0xff]  ;;  %v56_v33 = vld [vmem:[%s2480_s1 + $0x128] sm:$0xff]  ;;  %v1325_v34 = vpack.c.bf16 %v24_v31, %v23_v29  ;;  %v73_v37 = vld [vmem:[%s2480_s1 + $0x1b0] sm:$0xff]  ;;  %v1327_v39 = vpack.c.bf16 %v42_v36, %v41_v35 }
   0xa   :  { %1322 = vmatpush3.bf16.msra.mxu0 %v1321_v21  ;;  %v1357_v38 = vpack.c.bf16 %v56_v33, %v55_v32  ;;  %v74_v40 = vld [vmem:[%s2480_s1 + $0x1b8] sm:$0xff]  ;;  %v25_v41 = vld [vmem:[%s2480_s1 + $0x30] sm:$0xff]  ;;  %v43_v46 = vld [vmem:[%s2480_s1 + $0xc0] sm:$0xff] }
   0xb   :  { %1354 = vmatpush3.bf16.msra.mxu1 %v1353_v25  ;;  %1324 = vmatprep.subr.bf16.mxu0 %v1323_v26  ;;  %v26_v42 = vld [vmem:[%s2480_s1 + $0x38] sm:$0xff]  ;;  %v1359_v43 = vpack.c.bf16 %v74_v40, %v73_v37  ;;  %v57_v44 = vld [vmem:[%s2480_s1 + $0x130] sm:$0xff]  ;;  %v44_v50 = vld [vmem:[%s2480_s1 + $0xc8] sm:$0xff] }
   0xc   :  { %1356 = vmatprep.subr.bf16.mxu1 %v1355_v30  ;;  %v58_v45 = vld [vmem:[%s2480_s1 + $0x138] sm:$0xff]  ;;  %v75_v51 = vld [vmem:[%s2480_s1 + $0x1c0] sm:$0xff]  ;;  %v76_v52 = vld [vmem:[%s2480_s1 + $0x1c8] sm:$0xff]  ;;  %v1329_v53 = vpack.c.bf16 %v26_v42, %v25_v41  ;;  %v1331_v55 = vpack.c.bf16 %v44_v50, %v43_v46 }
   0xd   :  { %v1361_v54 = vpack.c.bf16 %v58_v45, %v57_v44  ;;  %v27_v56 = vld [vmem:[%s2480_s1 + $0x40] sm:$0xff]  ;;  %v28_v57 = vld [vmem:[%s2480_s1 + $0x48] sm:$0xff]  ;;  %v1363_v59 = vpack.c.bf16 %v76_v52, %v75_v51  ;;  %v45_v61 = vld [vmem:[%s2480_s1 + $0xd0] sm:$0xff] }
   0xe   :  { %1326 = vmatpush3.bf16.msra.mxu0 %v1325_v34  ;;  %v59_v58 = vld [vmem:[%s2480_s1 + $0x140] sm:$0xff]  ;;  %v60_v60 = vld [vmem:[%s2480_s1 + $0x148] sm:$0xff]  ;;  %v46_v62 = vld [vmem:[%s2480_s1 + $0xd8] sm:$0xff]  ;;  %v1333_v3 = vpack.c.bf16 %v28_v57, %v27_v56 }
   0xf   :  { %1358 = vmatpush3.bf16.msra.mxu1 %v1357_v38  ;;  %1328 = vmatprep.subr.bf16.mxu0 %v1327_v39  ;;  %v77_v1 = vld [vmem:[%s2480_s1 + $0x1d0] sm:$0xff]  ;;  %v78_v2 = vld [vmem:[%s2480_s1 + $0x1d8] sm:$0xff]  ;;  %v1365_v4 = vpack.c.bf16 %v60_v60, %v59_v58  ;;  %v1335_v5 = vpack.c.bf16 %v46_v62, %v45_v61  ;;  %v47_v11 = vld [vmem:[%s2480_s1 + $0xe0] sm:$0xff] }
  0x10   :  { %1360 = vmatprep.subr.bf16.mxu1 %v1359_v43  ;;  %v29_v6 = vld [vmem:[%s2480_s1 + $0x50] sm:$0xff]  ;;  %v30_v7 = vld [vmem:[%s2480_s1 + $0x58] sm:$0xff]  ;;  %v1367_v9 = vpack.c.bf16 %v78_v2, %v77_v1  ;;  %v48_v12 = vld [vmem:[%s2480_s1 + $0xe8] sm:$0xff] }
  0x11   :  { %v61_v8 = vld [vmem:[%s2480_s1 + $0x150] sm:$0xff]  ;;  %v62_v10 = vld [vmem:[%s2480_s1 + $0x158] sm:$0xff]  ;;  %v79_v14 = vld [vmem:[%s2480_s1 + $0x1e0] sm:$0xff]  ;;  %v1337_v16 = vpack.c.bf16 %v30_v7, %v29_v6  ;;  %v1339_v19 = vpack.c.bf16 %v48_v12, %v47_v11 }
  0x12   :  { %1330 = vmatpush3.bf16.msra.mxu0 %v1329_v53  ;;  %v80_v15 = vld [vmem:[%s2480_s1 + $0x1e8] sm:$0xff]  ;;  %v31_v17 = vld [vmem:[%s2480_s1 + $0x60] sm:$0xff]  ;;  %v1369_v18 = vpack.c.bf16 %v62_v10, %v61_v8  ;;  %v49_v25 = vld [vmem:[%s2480_s1 + $0xf0] sm:$0xff] }
  0x13   :  { %1362 = vmatpush3.bf16.msra.mxu1 %v1361_v54  ;;  %1332 = vmatprep.subr.bf16.mxu0 %v1331_v55  ;;  %v32_v20 = vld [vmem:[%s2480_s1 + $0x68] sm:$0xff]  ;;  %v63_v21 = vld [vmem:[%s2480_s1 + $0x160] sm:$0xff]  ;;  %v1371_v23 = vpack.c.bf16 %v80_v15, %v79_v14  ;;  %v50_v26 = vld [vmem:[%s2480_s1 + $0xf8] sm:$0xff] }
  0x14   :  { %1364 = vmatprep.subr.bf16.mxu1 %v1363_v59  ;;  %v15_v22 = vld [vmem:[%s2479_s0] sm:$0xff]  ;;  %v64_v24 = vld [vmem:[%s2480_s1 + $0x168] sm:$0xff]  ;;  %v81_v29 = vld [vmem:[%s2480_s1 + $0x1f0] sm:$0xff]  ;;  %v1341_v31 = vpack.c.bf16 %v32_v20, %v31_v17  ;;  %v1343_v35 = vpack.c.bf16 %v50_v26, %v49_v25 }
  0x15   :  { %v286_v27 = vrot.slane %v15_v22, %v1785_v13  ;;  %v279_v28 = vcombine.high %v15_v22, %v15_v22  ;;  %v82_v30 = vld [vmem:[%s2480_s1 + $0x1f8] sm:$0xff]  ;;  %v1373_v34 = vpack.c.bf16 %v64_v24, %v63_v21  ;;  %v33_v36 = vld [vmem:[%s2480_s1 + $0x70] sm:$0xff]  ;;  %v99_v42 = vld [vmem:[%s2480_s1 + $0x280] sm:$0xff] }
  0x16   :  { %1334 = vmatpush3.bf16.msra.mxu0 %v1333_v3  ;;  %v34_v37 = vld [vmem:[%s2480_s1 + $0x78] sm:$0xff]  ;;  %v65_v38 = vld [vmem:[%s2480_s1 + $0x170] sm:$0xff]  ;;  %v1375_v39 = vpack.c.bf16 %v82_v30, %v81_v29  ;;  %v100_v43 = vld [vmem:[%s2480_s1 + $0x288] sm:$0xff] }
  0x17   :  { %1366 = vmatpush3.bf16.msra.mxu1 %v1365_v4  ;;  %1336 = vmatprep.subr.bf16.mxu0 %v1335_v5  ;;  %v294_v32 = vcombine.high %v286_v27, %v286_v27  ;;  %v293_v33 = vrot.slane %v279_v28, %v1785_v13  ;;  %v66_v40 = vld [vmem:[%s2480_s1 + $0x178] sm:$0xff]  ;;  %v131_v44 = vld [vmem:[%s2480_s1 + $0x380] sm:$0xff]  ;;  %v132_v45 = vld [vmem:[%s2480_s1 + $0x388] sm:$0xff]  ;;  %v1345_v46 = vpack.c.bf16 %v34_v37, %v33_v36 }
  0x18   :  { %1368 = vmatprep.subr.bf16.mxu1 %v1367_v9  ;;  %v1377_v47 = vpack.c.bf16 %v66_v40, %v65_v38  ;;  %v1379_v48 = vpack.c.bf16 %v100_v43, %v99_v42  ;;  %v83_v49 = vld [vmem:[%s2480_s1 + $0x200] sm:$0xff]  ;;  %v84_v50 = vld [vmem:[%s2480_s1 + $0x208] sm:$0xff]  ;;  %v1411_v52 = vpack.c.bf16 %v132_v45, %v131_v44  ;;  %v101_v54 = vld [vmem:[%s2480_s1 + $0x290] sm:$0xff] }
  0x19   :  { %427 = vmatprep.mubr.f32.mxu0 %v294_v32  ;;  %v295_v41 = vcombine.high %v293_v33, %v293_v33  ;;  %v115_v51 = vld [vmem:[%s2480_s1 + $0x300] sm:$0xff]  ;;  %v116_v53 = vld [vmem:[%s2480_s1 + $0x308] sm:$0xff]  ;;  %v102_v55 = vld [vmem:[%s2480_s1 + $0x298] sm:$0xff]  ;;  %v1381_v58 = vpack.c.bf16 %v84_v50, %v83_v49 }
  0x1a   :  { %1338 = vmatpush3.bf16.msra.mxu0 %v1337_v16  ;;  %v133_v56 = vld [vmem:[%s2480_s1 + $0x390] sm:$0xff]  ;;  %v134_v57 = vld [vmem:[%s2480_s1 + $0x398] sm:$0xff]  ;;  %v1413_v59 = vpack.c.bf16 %v116_v53, %v115_v51  ;;  %v1383_v60 = vpack.c.bf16 %v102_v55, %v101_v54  ;;  %v103_v2 = vld [vmem:[%s2480_s1 + $0x2a0] sm:$0xff] }
  0x1b   :  { %1370 = vmatpush3.bf16.msra.mxu1 %v1369_v18  ;;  %1340 = vmatprep.subr.bf16.mxu0 %v1339_v19  ;;  %v85_v61 = vld [vmem:[%s2480_s1 + $0x210] sm:$0xff]  ;;  %v86_v62 = vld [vmem:[%s2480_s1 + $0x218] sm:$0xff]  ;;  %v1415_v0 = vpack.c.bf16 %v134_v57, %v133_v56  ;;  %v104_v3 = vld [vmem:[%s2480_s1 + $0x2a8] sm:$0xff] }
  0x1c   :  { %1372 = vmatprep.subr.bf16.mxu1 %v1371_v23  ;;  %497 = vmatprep.mubr.f32.mxu1 %v295_v41  ;;  %v117_v63 = vld [vmem:[%s2480_s1 + $0x310] sm:$0xff]  ;;  %v118_v1 = vld [vmem:[%s2480_s1 + $0x318] sm:$0xff]  ;;  %v135_v4 = vld [vmem:[%s2480_s1 + $0x3a0] sm:$0xff]  ;;  %v1385_v6 = vpack.c.bf16 %v86_v62, %v85_v61  ;;  %v1387_v8 = vpack.c.bf16 %v104_v3, %v103_v2 }
  0x1d   :  { %v136_v5 = vld [vmem:[%s2480_s1 + $0x3a8] sm:$0xff]  ;;  %v1417_v7 = vpack.c.bf16 %v118_v1, %v117_v63  ;;  %v87_v9 = vld [vmem:[%s2480_s1 + $0x220] sm:$0xff]  ;;  %v105_v15 = vld [vmem:[%s2480_s1 + $0x2b0] sm:$0xff] }
  0x1e   :  { %1342 = vmatpush3.bf16.msra.mxu0 %v1341_v31  ;;  %v88_v10 = vld [vmem:[%s2480_s1 + $0x228] sm:$0xff]  ;;  %v119_v11 = vld [vmem:[%s2480_s1 + $0x320] sm:$0xff]  ;;  %v1419_v12 = vpack.c.bf16 %v136_v5, %v135_v4  ;;  %v106_v16 = vld [vmem:[%s2480_s1 + $0x2b8] sm:$0xff] }
  0x1f   :  { %1374 = vmatpush3.bf16.msra.mxu1 %v1373_v34  ;;  %1344 = vmatprep.subr.bf16.mxu0 %v1343_v35  ;;  %v120_v14 = vld [vmem:[%s2480_s1 + $0x328] sm:$0xff]  ;;  %v137_v17 = vld [vmem:[%s2480_s1 + $0x3b0] sm:$0xff]  ;;  %v138_v18 = vld [vmem:[%s2480_s1 + $0x3b8] sm:$0xff]  ;;  %v1389_v19 = vpack.c.bf16 %v88_v10, %v87_v9  ;;  %v1391_v21 = vpack.c.bf16 %v106_v16, %v105_v15 }
  0x20   :  { %1376 = vmatprep.subr.bf16.mxu1 %v1375_v39  ;;  %v1421_v20 = vpack.c.bf16 %v120_v14, %v119_v11  ;;  %v89_v22 = vld [vmem:[%s2480_s1 + $0x230] sm:$0xff]  ;;  %v90_v23 = vld [vmem:[%s2480_s1 + $0x238] sm:$0xff]  ;;  %v1423_v25 = vpack.c.bf16 %v138_v18, %v137_v17  ;;  %v108_v28 = vld [vmem:[%s2480_s1 + $0x2c8] sm:$0xff] }
  0x21   :  { %v121_v24 = vld [vmem:[%s2480_s1 + $0x330] sm:$0xff]  ;;  %v122_v26 = vld [vmem:[%s2480_s1 + $0x338] sm:$0xff]  ;;  %v139_v29 = vld [vmem:[%s2480_s1 + $0x3c0] sm:$0xff]  ;;  %v1393_v32 = vpack.c.bf16 %v90_v23, %v89_v22 }
  0x22   :  { %1346 = vmatpush3.bf16.msra.mxu0 %v1345_v46  ;;  %v140_v30 = vld [vmem:[%s2480_s1 + $0x3c8] sm:$0xff]  ;;  %v1425_v35 = vpack.c.bf16 %v122_v26, %v121_v24  ;;  %v91_v37 = vld [vmem:[%s2480_s1 + $0x240] sm:$0xff]  ;;  %v109_v42 = vld [vmem:[%s2480_s1 + $0x2d0] sm:$0xff] }
  0x23   :  { %1378 = vmatpush3.bf16.msra.mxu1 %v1377_v47  ;;  %1380 = vmatprep.subr.bf16.mxu0 %v1379_v48  ;;  %v16_v31 = vld [vmem:[%s2479_s0 + $0x8] sm:$0xff]  ;;  %v123_v39 = vld [vmem:[%s2480_s1 + $0x340] sm:$0xff]  ;;  %v1427_v40 = vpack.c.bf16 %v140_v30, %v139_v29  ;;  %v110_v43 = vld [vmem:[%s2480_s1 + $0x2d8] sm:$0xff] }
  0x24   :  { %1412 = vmatprep.subr.bf16.mxu1 %v1411_v52  ;;  %v296_v34 = vcombine.high %v16_v31, %v16_v31  ;;  %v92_v38 = vld [vmem:[%s2480_s1 + $0x248] sm:$0xff]  ;;  %v141_v46 = vld [vmem:[%s2480_s1 + $0x3d0] sm:$0xff]  ;;  %v142_v47 = vld [vmem:[%s2480_s1 + $0x3d8] sm:$0xff]  ;;  %v1399_v51 = vpack.c.bf16 %v110_v43, %v109_v42 }
  0x25   :  { %428 = vmatmul.mubr.f32.vlgmr.msra.gmra.mrb[0].mxu0 %v286_v27  ;;  %v107_v27 = vld [vmem:[%s2480_s1 + $0x2c0] sm:$0xff]  ;;  %v124_v41 = vld [vmem:[%s2480_s1 + $0x348] sm:$0xff]  ;;  %v1397_v48 = vpack.c.bf16 %v92_v38, %v91_v37  ;;  %v93_v52 = vld [vmem:[%s2480_s1 + $0x250] sm:$0xff]  ;;  %v1431_v55 = vpack.c.bf16 %v142_v47, %v141_v46 }
  0x26   :  { %498 = vmatmul.mubr.f32.vlgmr.msra.gmra.mrb[0].mxu1 %v293_v33  ;;  %1382 = vmatpush3.bf16.msra.mxu0 %v1381_v58  ;;  %v1946_v33 = vrot.slane %v16_v31, %v1785_v13  ;;  %v1395_v36 = vpack.c.bf16 %v108_v28, %v107_v27  ;;  %v1969_v45 = vrot.slane %v296_v34, %v1785_v13  ;;  %v94_v53 = vld [vmem:[%s2480_s1 + $0x258] sm:$0xff]  ;;  %v125_v54 = vld [vmem:[%s2480_s1 + $0x350] sm:$0xff]  ;;  %v111_v57 = vld [vmem:[%s2480_s1 + $0x2e0] sm:$0xff] }
  0x27   :  { %1414 = vmatpush3.bf16.msra.mxu1 %v1413_v59  ;;  %1384 = vmatprep.subr.bf16.mxu0 %v1383_v60  ;;  %v1429_v50 = vpack.c.bf16 %v124_v41, %v123_v39  ;;  %v126_v56 = vld [vmem:[%s2480_s1 + $0x358] sm:$0xff]  ;;  %v112_v58 = vld [vmem:[%s2480_s1 + $0x2e8] sm:$0xff]  ;;  %v143_v59 = vld [vmem:[%s2480_s1 + $0x3e0] sm:$0xff]  ;;  %v1401_v61 = vpack.c.bf16 %v94_v53, %v93_v52 }
  0x28   :  { %1416 = vmatprep.subr.bf16.mxu1 %v1415_v0  ;;  %v311_v44 = vcombine.high %v1946_v33, %v1946_v33  ;;  %v312_v49 = vcombine.high %v1969_v45, %v1969_v45  ;;  %v144_v60 = vld [vmem:[%s2480_s1 + $0x3e8] sm:$0xff]  ;;  %v1433_v62 = vpack.c.bf16 %v126_v56, %v125_v54  ;;  %v1403_v63 = vpack.c.bf16 %v112_v58, %v111_v57  ;;  %v95_v0 = vld [vmem:[%s2480_s1 + $0x260] sm:$0xff]  ;;  %v113_v5 = vld [vmem:[%s2480_s1 + $0x2f0] sm:$0xff] }
  0x29   :  { %v96_v1 = vld [vmem:[%s2480_s1 + $0x268] sm:$0xff]  ;;  %v127_v2 = vld [vmem:[%s2480_s1 + $0x360] sm:$0xff]  ;;  %v1435_v3 = vpack.c.bf16 %v144_v60, %v143_v59  ;;  %v98_v14 = vld [vmem:[%s2480_s1 + $0x278] sm:$0xff] }
  0x2a   :  { %1386 = vmatpush3.bf16.msra.mxu0 %v1385_v6  ;;  %567 = vmatprep.mubr.f32.mxu0 %v311_v44  ;;  %v128_v4 = vld [vmem:[%s2480_s1 + $0x368] sm:$0xff]  ;;  %v114_v6 = vld [vmem:[%s2480_s1 + $0x2f8] sm:$0xff]  ;;  %v1405_v9 = vpack.c.bf16 %v96_v1, %v95_v0  ;;  %v129_v15 = vld [vmem:[%s2480_s1 + $0x370] sm:$0xff] }
  0x2b   :  { %1418 = vmatpush3.bf16.msra.mxu1 %v1417_v7  ;;  %1388 = vmatprep.subr.bf16.mxu0 %v1387_v8  ;;  %v145_v7 = vld [vmem:[%s2480_s1 + $0x3f0] sm:$0xff]  ;;  %v146_v8 = vld [vmem:[%s2480_s1 + $0x3f8] sm:$0xff]  ;;  %v1437_v10 = vpack.c.bf16 %v128_v4, %v127_v2  ;;  %v1407_v11 = vpack.c.bf16 %v114_v6, %v113_v5  ;;  %v163_v18 = vld [vmem:[%s2480_s1 + $0x480] sm:$0xff] }
  0x2c   :  { %1420 = vmatprep.subr.bf16.mxu1 %v1419_v12  ;;  %637 = vmatprep.mubr.f32.mxu1 %v312_v49  ;;  %v97_v12 = vld [vmem:[%s2480_s1 + $0x270] sm:$0xff]  ;;  %v1439_v16 = vpack.c.bf16 %v146_v8, %v145_v7  ;;  %v130_v17 = vld [vmem:[%s2480_s1 + $0x378] sm:$0xff]  ;;  %v147_v23 = vld [vmem:[%s2480_s1 + $0x400] sm:$0xff] }
  0x2d   :  { %v1409_v22 = vpack.c.bf16 %v98_v14, %v97_v12  ;;  %v1441_v24 = vpack.c.bf16 %v130_v17, %v129_v15  ;;  %v148_v26 = vld [vmem:[%s2480_s1 + $0x408] sm:$0xff]  ;;  %v179_v27 = vld [vmem:[%s2480_s1 + $0x500] sm:$0xff]  ;;  %v165_v30 = vld [vmem:[%s2480_s1 + $0x490] sm:$0xff] }
  0x2e   :  { %1390 = vmatpush3.bf16.msra.mxu0 %v1389_v19  ;;  %v164_v19 = vld [vmem:[%s2480_s1 + $0x488] sm:$0xff]  ;;  %v166_v31 = vld [vmem:[%s2480_s1 + $0x498] sm:$0xff]  ;;  %v17_v37 = vld [vmem:[%s2479_s0 + $0x10] sm:$0xff] }
  0x2f   :  { %1422 = vmatpush3.bf16.msra.mxu1 %v1421_v20  ;;  %1392 = vmatprep.subr.bf16.mxu0 %v1391_v21  ;;  %v195_v20 = vld [vmem:[%s2480_s1 + $0x580] sm:$0xff]  ;;  %v196_v21 = vld [vmem:[%s2480_s1 + $0x588] sm:$0xff]  ;;  %v198_v34 = vld [vmem:[%s2480_s1 + $0x598] sm:$0xff]  ;;  %v1447_v38 = vpack.c.bf16 %v166_v31, %v165_v30  ;;  %v2088_v42 = vrot.slane %v17_v37, %v1785_v13  ;;  %v313_v43 = vcombine.high %v17_v37, %v17_v37 }
  0x30   :  { %1424 = vmatprep.subr.bf16.mxu1 %v1423_v25  ;;  %v1443_v25 = vpack.c.bf16 %v164_v19, %v163_v18  ;;  %v180_v28 = vld [vmem:[%s2480_s1 + $0x508] sm:$0xff]  ;;  %v1475_v29 = vpack.c.bf16 %v196_v21, %v195_v20  ;;  %v149_v39 = vld [vmem:[%s2480_s1 + $0x410] sm:$0xff]  ;;  %v182_v46 = vld [vmem:[%s2480_s1 + $0x518] sm:$0xff] }
  0x31   :  { %v181_v41 = vld [vmem:[%s2480_s1 + $0x510] sm:$0xff]  ;;  %v167_v47 = vld [vmem:[%s2480_s1 + $0x4a0] sm:$0xff]  ;;  %v2109_v52 = vrot.slane %v313_v43, %v1785_v13  ;;  %v152_v56 = vld [vmem:[%s2480_s1 + $0x428] sm:$0xff] }
  0x32   :  { %1394 = vmatpush3.bf16.msra.mxu0 %v1393_v32  ;;  %v197_v32 = vld [vmem:[%s2480_s1 + $0x590] sm:$0xff]  ;;  %v199_v49 = vld [vmem:[%s2480_s1 + $0x5a0] sm:$0xff]  ;;  %v184_v59 = vld [vmem:[%s2480_s1 + $0x528] sm:$0xff] }
  0x33   :  { %1426 = vmatpush3.bf16.msra.mxu1 %v1425_v35  ;;  %1396 = vmatprep.subr.bf16.mxu0 %v1395_v36  ;;  %v1445_v35 = vpack.c.bf16 %v148_v26, %v147_v23  ;;  %v1477_v36 = vpack.c.bf16 %v180_v28, %v179_v27  ;;  %v1479_v44 = vpack.c.bf16 %v198_v34, %v197_v32  ;;  %v183_v57 = vld [vmem:[%s2480_s1 + $0x520] sm:$0xff]  ;;  %v169_v60 = vld [vmem:[%s2480_s1 + $0x4b0] sm:$0xff]  ;;  %v154_v4 = vld [vmem:[%s2480_s1 + $0x438] sm:$0xff] }
  0x34   :  { %1428 = vmatprep.subr.bf16.mxu1 %v1427_v40  ;;  %v150_v40 = vld [vmem:[%s2480_s1 + $0x418] sm:$0xff]  ;;  %v1485_v1 = vpack.c.bf16 %v184_v59, %v183_v57  ;;  %v185_v5 = vld [vmem:[%s2480_s1 + $0x530] sm:$0xff]  ;;  %v171_v8 = vld [vmem:[%s2480_s1 + $0x4c0] sm:$0xff] }
  0x35   :  { %v1449_v53 = vpack.c.bf16 %v150_v40, %v149_v39  ;;  %v186_v7 = vld [vmem:[%s2480_s1 + $0x538] sm:$0xff]  ;;  %v156_v17 = vld [vmem:[%s2480_s1 + $0x448] sm:$0xff]  ;;  %v187_v18 = vld [vmem:[%s2480_s1 + $0x540] sm:$0xff] }
  0x36   :  { %1398 = vmatpush3.bf16.msra.mxu0 %v1397_v48  ;;  %v168_v48 = vld [vmem:[%s2480_s1 + $0x4a8] sm:$0xff]  ;;  %v1489_v14 = vpack.c.bf16 %v186_v7, %v185_v5  ;;  %v173_v21 = vld [vmem:[%s2480_s1 + $0x4d0] sm:$0xff]  ;;  %v190_v32 = vld [vmem:[%s2480_s1 + $0x558] sm:$0xff] }
  0x37   :  { %1430 = vmatpush3.bf16.msra.mxu1 %v1429_v50  ;;  %1400 = vmatprep.subr.bf16.mxu0 %v1399_v51  ;;  %v200_v50 = vld [vmem:[%s2480_s1 + $0x5a8] sm:$0xff]  ;;  %v328_v51 = vcombine.high %v2088_v42, %v2088_v42  ;;  %v1451_v54 = vpack.c.bf16 %v168_v48, %v167_v47  ;;  %v205_v23 = vld [vmem:[%s2480_s1 + $0x5d0] sm:$0xff]  ;;  %v175_v34 = vld [vmem:[%s2480_s1 + $0x4e0] sm:$0xff] }
  0x38   :  { %1432 = vmatprep.subr.bf16.mxu1 %v1431_v55  ;;  %v151_v55 = vld [vmem:[%s2480_s1 + $0x420] sm:$0xff]  ;;  %v1483_v58 = vpack.c.bf16 %v200_v50, %v199_v49  ;;  %v188_v20 = vld [vmem:[%s2480_s1 + $0x548] sm:$0xff]  ;;  %v157_v28 = vld [vmem:[%s2480_s1 + $0x450] sm:$0xff] }
  0x39   :  { %v1453_v0 = vpack.c.bf16 %v152_v56, %v151_v55  ;;  %v1493_v26 = vpack.c.bf16 %v188_v20, %v187_v18  ;;  %v189_v30 = vld [vmem:[%s2480_s1 + $0x550] sm:$0xff]  ;;  %v208_v37 = vld [vmem:[%s2480_s1 + $0x5e8] sm:$0xff]  ;;  %v159_v39 = vld [vmem:[%s2480_s1 + $0x460] sm:$0xff] }
  0x3a   :  { %1402 = vmatpush3.bf16.msra.mxu0 %v1401_v61  ;;  %v170_v61 = vld [vmem:[%s2480_s1 + $0x4b8] sm:$0xff]  ;;  %v1497_v40 = vpack.c.bf16 %v190_v32, %v189_v30  ;;  %v160_v43 = vld [vmem:[%s2480_s1 + $0x468] sm:$0xff]  ;;  %v177_v48 = vld [vmem:[%s2480_s1 + $0x4f0] sm:$0xff] }
  0x3b   :  { %1434 = vmatpush3.bf16.msra.mxu1 %v1433_v62  ;;  %1404 = vmatprep.subr.bf16.mxu0 %v1403_v63  ;;  %v201_v62 = vld [vmem:[%s2480_s1 + $0x5b0] sm:$0xff]  ;;  %v202_v63 = vld [vmem:[%s2480_s1 + $0x5b8] sm:$0xff]  ;;  %v1455_v2 = vpack.c.bf16 %v170_v61, %v169_v60 }
  0x3c   :  { %1436 = vmatprep.subr.bf16.mxu1 %v1435_v3  ;;  %v153_v3 = vld [vmem:[%s2480_s1 + $0x430] sm:$0xff]  ;;  %v1487_v6 = vpack.c.bf16 %v202_v63, %v201_v62  ;;  %v178_v49 = vld [vmem:[%s2480_s1 + $0x4f8] sm:$0xff] }
  0x3d   :  { %v1457_v12 = vpack.c.bf16 %v154_v4, %v153_v3 }
  0x3e   :  { %1406 = vmatpush3.bf16.msra.mxu0 %v1405_v9  ;;  %v172_v9 = vld [vmem:[%s2480_s1 + $0x4c8] sm:$0xff] }
  0x3f   :  { %1438 = vmatpush3.bf16.msra.mxu1 %v1437_v10  ;;  %1408 = vmatprep.subr.bf16.mxu0 %v1407_v11  ;;  %v203_v10 = vld [vmem:[%s2480_s1 + $0x5c0] sm:$0xff]  ;;  %v204_v11 = vld [vmem:[%s2480_s1 + $0x5c8] sm:$0xff]  ;;  %v1459_v15 = vpack.c.bf16 %v172_v9, %v171_v8 }
  0x40   :  { %1440 = vmatprep.subr.bf16.mxu1 %v1439_v16  ;;  %v155_v16 = vld [vmem:[%s2480_s1 + $0x440] sm:$0xff]  ;;  %v1491_v19 = vpack.c.bf16 %v204_v11, %v203_v10 }
  0x42   :  { %1410 = vmatpush3.bf16.msra.mxu0 %v1409_v22  ;;  %v174_v22 = vld [vmem:[%s2480_s1 + $0x4d8] sm:$0xff] }
  0x43   :  { %1442 = vmatpush3.bf16.msra.mxu1 %v1441_v24  ;;  %1444 = vmatprep.subr.bf16.mxu0 %v1443_v25  ;;  %v206_v24 = vld [vmem:[%s2480_s1 + $0x5d8] sm:$0xff]  ;;  %v1461_v25 = vpack.c.bf16 %v156_v17, %v155_v16  ;;  %v1463_v27 = vpack.c.bf16 %v174_v22, %v173_v21 }
  0x44   :  { %1476 = vmatprep.subr.bf16.mxu1 %v1475_v29  ;;  %v158_v29 = vld [vmem:[%s2480_s1 + $0x458] sm:$0xff]  ;;  %v1495_v31 = vpack.c.bf16 %v206_v24, %v205_v23 }
  0x45   :  { %568 = vmatmul.mubr.f32.vlgmr.msra.gmra.mrb[2].mxu0 %v1946_v33  ;;  %v1481_v33 = vpack.c.bf16 %v182_v46, %v181_v41  ;;  %v192_v46 = vld [vmem:[%s2480_s1 + $0x568] sm:$0xff] }
  0x46   :  { %1446 = vmatpush3.bf16.msra.mxu0 %v1445_v35  ;;  %638 = vmatmul.mubr.f32.vlgmr.msra.gmra.mrb[2].mxu1 %v1969_v45  ;;  %v329_v45 = vcombine.high %v2109_v52, %v2109_v52  ;;  %v176_v35 = vld [vmem:[%s2480_s1 + $0x4e8] sm:$0xff] }
  0x47   :  { %1478 = vmatpush3.bf16.msra.mxu1 %v1477_v36  ;;  %1448 = vmatprep.subr.bf16.mxu0 %v1447_v38  ;;  %v207_v36 = vld [vmem:[%s2480_s1 + $0x5e0] sm:$0xff]  ;;  %v1465_v38 = vpack.c.bf16 %v158_v29, %v157_v28  ;;  %v1467_v41 = vpack.c.bf16 %v176_v35, %v175_v34 }
  0x48   :  { %1480 = vmatprep.subr.bf16.mxu1 %v1479_v44  ;;  %707 = vmatprep.mubr.f32.mxu0 %v328_v51  ;;  %v191_v44 = vld [vmem:[%s2480_s1 + $0x560] sm:$0xff]  ;;  %v1499_v47 = vpack.c.bf16 %v208_v37, %v207_v36 }
  0x49   :  { %777 = vmatprep.mubr.f32.mxu1 %v329_v45 }
  0x4a   :  { %1450 = vmatpush3.bf16.msra.mxu0 %v1449_v53 }
  0x4b   :  { %1482 = vmatpush3.bf16.msra.mxu1 %v1481_v33  ;;  %1452 = vmatprep.subr.bf16.mxu0 %v1451_v54 }
  0x4c   :  { %1484 = vmatprep.subr.bf16.mxu1 %v1483_v58 }
  0x4e   :  { %1454 = vmatpush3.bf16.msra.mxu0 %v1453_v0 }
  0x4f   :  { %1486 = vmatpush3.bf16.msra.mxu1 %v1485_v1  ;;  %1456 = vmatprep.subr.bf16.mxu0 %v1455_v2 }
  0x50   :  { %1488 = vmatprep.subr.bf16.mxu1 %v1487_v6 }
  0x52   :  { %1458 = vmatpush3.bf16.msra.mxu0 %v1457_v12 }
  0x53   :  { %1490 = vmatpush3.bf16.msra.mxu1 %v1489_v14  ;;  %1460 = vmatprep.subr.bf16.mxu0 %v1459_v15 }
  0x54   :  { %1492 = vmatprep.subr.bf16.mxu1 %v1491_v19 }
  0x56   :  { %1462 = vmatpush3.bf16.msra.mxu0 %v1461_v25 }
  0x57   :  { %1494 = vmatpush3.bf16.msra.mxu1 %v1493_v26  ;;  %1464 = vmatprep.subr.bf16.mxu0 %v1463_v27 }
  0x58   :  { %1496 = vmatprep.subr.bf16.mxu1 %v1495_v31 }
  0x59   :  { %8 = vsyncpa [#allocation3], 0  ;;  %v209_v50 = vld [vmem:[%s2480_s1 + $0x5f0] sm:$0xff]  ;;  %v210_v51 = vld [vmem:[%s2480_s1 + $0x5f8] sm:$0xff]  ;;  %v1469_v53 = vpack.c.bf16 %v160_v43, %v159_v39  ;;  %v1501_v54 = vpack.c.bf16 %v192_v46, %v191_v44  ;;  %v1471_v55 = vpack.c.bf16 %v178_v49, %v177_v48  ;;  %vm1612_vm0 = vmmov 0  }
  0x5a   :  { %1466 = vmatpush3.bf16.msra.mxu0 %v1465_v38  ;;  %v18_v33 = vld [vmem:[%s2479_s0 + $0x18] sm:$0xff]  ;;  %v161_v56 = vld [vmem:[%s2480_s1 + $0x470] sm:$0xff]  ;;  %v1503_v58 = vpack.c.bf16 %v210_v51, %v209_v50  ;;  %v227_v60 = vld [vmem:[%s2480_s1 + $0x680] sm:$0xff]  ;;  %vm928_vm1 = vcmask 261120   ;;  %vm1002_vm2 = vcmask 74752  }
  0x5b   :  { %1498 = vmatpush3.bf16.msra.mxu1 %v1497_v40  ;;  %1468 = vmatprep.subr.bf16.mxu0 %v1467_v41  ;;  %v162_v57 = vld [vmem:[%s2480_s1 + $0x478] sm:$0xff]  ;;  %v193_v45 = vld [vmem:[%s2480_s1 + $0x570] sm:$0xff]  ;;  %v228_v61 = vld [vmem:[%s2480_s1 + $0x688] sm:$0xff]  ;;  %v330_v0 = vcombine.high %v18_v33, %v18_v33  ;;  %v2280_v11 = vrot.slane %v18_v33, %v1785_v13 }
  0x5c   :  { %1500 = vmatprep.subr.bf16.mxu1 %v1499_v47  ;;  %v194_v59 = vld [vmem:[%s2480_s1 + $0x578] sm:$0xff]  ;;  %v259_v62 = vld [vmem:[%s2480_s1 + $0x780] sm:$0xff]  ;;  %v260_v63 = vld [vmem:[%s2480_s1 + $0x788] sm:$0xff]  ;;  %v1473_v1 = vpack.c.bf16 %v162_v57, %v161_v56  ;;  %v1507_v3 = vpack.c.bf16 %v228_v61, %v227_v60 }
  0x5d   :  { %v1505_v2 = vpack.c.bf16 %v194_v59, %v193_v45  ;;  %v211_v4 = vld [vmem:[%s2480_s1 + $0x600] sm:$0xff]  ;;  %v212_v5 = vld [vmem:[%s2480_s1 + $0x608] sm:$0xff]  ;;  %v1539_v7 = vpack.c.bf16 %v260_v63, %v259_v62  ;;  %v229_v9 = vld [vmem:[%s2480_s1 + $0x690] sm:$0xff]  ;;  %v2289_v15 = vrot.slane %v330_v0, %v1785_v13  ;;  %v345_v25 = vcombine.high %v2280_v11, %v2280_v11 }
  0x5e   :  { %1470 = vmatpush3.bf16.msra.mxu0 %v1469_v53  ;;  %v243_v6 = vld [vmem:[%s2480_s1 + $0x700] sm:$0xff]  ;;  %v244_v8 = vld [vmem:[%s2480_s1 + $0x708] sm:$0xff]  ;;  %v230_v10 = vld [vmem:[%s2480_s1 + $0x698] sm:$0xff]  ;;  %v1509_v16 = vpack.c.bf16 %v212_v5, %v211_v4 }
  0x5f   :  { %1502 = vmatpush3.bf16.msra.mxu1 %v1501_v54  ;;  %1472 = vmatprep.subr.bf16.mxu0 %v1471_v55  ;;  %v261_v12 = vld [vmem:[%s2480_s1 + $0x790] sm:$0xff]  ;;  %v262_v14 = vld [vmem:[%s2480_s1 + $0x798] sm:$0xff]  ;;  %v1541_v17 = vpack.c.bf16 %v244_v8, %v243_v6  ;;  %v1511_v18 = vpack.c.bf16 %v230_v10, %v229_v9  ;;  %v231_v23 = vld [vmem:[%s2480_s1 + $0x6a0] sm:$0xff]  ;;  %v346_v28 = vcombine.high %v2289_v15, %v2289_v15 }
  0x60   :  { %1504 = vmatprep.subr.bf16.mxu1 %v1503_v58  ;;  %v213_v19 = vld [vmem:[%s2480_s1 + $0x610] sm:$0xff]  ;;  %v214_v20 = vld [vmem:[%s2480_s1 + $0x618] sm:$0xff]  ;;  %v1543_v13 = vpack.c.bf16 %v262_v14, %v261_v12  ;;  %v232_v24 = vld [vmem:[%s2480_s1 + $0x6a8] sm:$0xff] }
  0x61   :  { %v245_v21 = vld [vmem:[%s2480_s1 + $0x710] sm:$0xff]  ;;  %v246_v22 = vld [vmem:[%s2480_s1 + $0x718] sm:$0xff]  ;;  %v263_v26 = vld [vmem:[%s2480_s1 + $0x7a0] sm:$0xff]  ;;  %v1513_v29 = vpack.c.bf16 %v214_v20, %v213_v19  ;;  %v1515_v31 = vpack.c.bf16 %v232_v24, %v231_v23 }
  0x62   :  { %1474 = vmatpush3.bf16.msra.mxu0 %v1473_v1  ;;  %v264_v27 = vld [vmem:[%s2480_s1 + $0x7a8] sm:$0xff]  ;;  %v1545_v30 = vpack.c.bf16 %v246_v22, %v245_v21  ;;  %v247_v34 = vld [vmem:[%s2480_s1 + $0x720] sm:$0xff]  ;;  %v233_v36 = vld [vmem:[%s2480_s1 + $0x6b0] sm:$0xff] }
  0x63   :  { %1506 = vmatpush3.bf16.msra.mxu1 %v1505_v2  ;;  %1508 = vmatprep.subr.bf16.mxu0 %v1507_v3  ;;  %v216_v32 = vld [vmem:[%s2480_s1 + $0x628] sm:$0xff]  ;;  %v1547_v35 = vpack.c.bf16 %v264_v27, %v263_v26  ;;  %v234_v37 = vld [vmem:[%s2480_s1 + $0x6b8] sm:$0xff]  ;;  %v265_v38 = vld [vmem:[%s2480_s1 + $0x7b0] sm:$0xff] }
  0x64   :  { %1540 = vmatprep.subr.bf16.mxu1 %v1539_v7  ;;  %v266_v39 = vld [vmem:[%s2480_s1 + $0x7b8] sm:$0xff]  ;;  %v1519_v43 = vpack.c.bf16 %v234_v37, %v233_v36  ;;  %v217_v44 = vld [vmem:[%s2480_s1 + $0x630] sm:$0xff]  ;;  %v235_v50 = vld [vmem:[%s2480_s1 + $0x6c0] sm:$0xff] }
  0x65   :  { %708 = vmatmul.mubr.f32.vlgmr.msra.gmra.mrb[4].mxu0 %v2088_v42  ;;  %v215_v42 = vld [vmem:[%s2480_s1 + $0x620] sm:$0xff]  ;;  %v218_v46 = vld [vmem:[%s2480_s1 + $0x638] sm:$0xff]  ;;  %v249_v47 = vld [vmem:[%s2480_s1 + $0x730] sm:$0xff]  ;;  %v1551_v48 = vpack.c.bf16 %v266_v39, %v265_v38  ;;  %v1611_v39 = vmov 0.0|0.0  }
  0x66   :  { %1510 = vmatpush3.bf16.msra.mxu0 %v1509_v16  ;;  %778 = vmatmul.mubr.f32.vlgmr.msra.gmra.mrb[4].mxu1 %v2109_v52  ;;  %v248_v52 = vld [vmem:[%s2480_s1 + $0x728] sm:$0xff]  ;;  %v1517_v40 = vpack.c.bf16 %v216_v32, %v215_v42  ;;  %v250_v49 = vld [vmem:[%s2480_s1 + $0x738] sm:$0xff]  ;;  %v267_v53 = vld [vmem:[%s2480_s1 + $0x7c0] sm:$0xff]  ;;  %v1521_v54 = vpack.c.bf16 %v218_v46, %v217_v44 }
  0x67   :  { %1542 = vmatpush3.bf16.msra.mxu1 %v1541_v17  ;;  %1512 = vmatprep.subr.bf16.mxu0 %v1511_v18  ;;  %v1549_v41 = vpack.c.bf16 %v248_v52, %v247_v34  ;;  %v236_v51 = vld [vmem:[%s2480_s1 + $0x6c8] sm:$0xff]  ;;  %v1553_v55 = vpack.c.bf16 %v250_v49, %v249_v47  ;;  %v219_v57 = vld [vmem:[%s2480_s1 + $0x640] sm:$0xff]  ;;  %v237_v61 = vld [vmem:[%s2480_s1 + $0x6d0] sm:$0xff] }
  0x68   :  { %1544 = vmatprep.subr.bf16.mxu1 %v1543_v13  ;;  %847 = vmatprep.mubr.f32.mxu0 %v345_v25  ;;  %v268_v33 = vld [vmem:[%s2480_s1 + $0x7c8] sm:$0xff]  ;;  %v1523_v56 = vpack.c.bf16 %v236_v51, %v235_v50  ;;  %v251_v58 = vld [vmem:[%s2480_s1 + $0x740] sm:$0xff]  ;;  %v238_v62 = vld [vmem:[%s2480_s1 + $0x6d8] sm:$0xff] }
  0x69   :  { %917 = vmatprep.mubr.f32.mxu1 %v346_v28  ;;  %v220_v45 = vld [vmem:[%s2480_s1 + $0x648] sm:$0xff]  ;;  %v1555_v59 = vpack.c.bf16 %v268_v33, %v267_v53  ;;  %v269_v63 = vld [vmem:[%s2480_s1 + $0x7d0] sm:$0xff]  ;;  %v270_v0 = vld [vmem:[%s2480_s1 + $0x7d8] sm:$0xff]  ;;  %v1527_v3 = vpack.c.bf16 %v238_v62, %v237_v61 }
  0x6a   :  { %1514 = vmatpush3.bf16.msra.mxu0 %v1513_v29  ;;  %v252_v60 = vld [vmem:[%s2480_s1 + $0x748] sm:$0xff]  ;;  %v1525_v1 = vpack.c.bf16 %v220_v45, %v219_v57  ;;  %v221_v4 = vld [vmem:[%s2480_s1 + $0x650] sm:$0xff]  ;;  %v222_v5 = vld [vmem:[%s2480_s1 + $0x658] sm:$0xff]  ;;  %v1559_v7 = vpack.c.bf16 %v270_v0, %v269_v63 }
  0x6b   :  { %1546 = vmatpush3.bf16.msra.mxu1 %v1545_v30  ;;  %1516 = vmatprep.subr.bf16.mxu0 %v1515_v31  ;;  %v1557_v2 = vpack.c.bf16 %v252_v60, %v251_v58  ;;  %v253_v6 = vld [vmem:[%s2480_s1 + $0x750] sm:$0xff]  ;;  %v254_v8 = vld [vmem:[%s2480_s1 + $0x758] sm:$0xff]  ;;  %v239_v9 = vld [vmem:[%s2480_s1 + $0x6e0] sm:$0xff]  ;;  %v1529_v16 = vpack.c.bf16 %v222_v5, %v221_v4 }
  0x6c   :  { %1548 = vmatprep.subr.bf16.mxu1 %v1547_v35  ;;  %v240_v10 = vld [vmem:[%s2480_s1 + $0x6e8] sm:$0xff]  ;;  %v271_v12 = vld [vmem:[%s2480_s1 + $0x7e0] sm:$0xff]  ;;  %v1561_v17 = vpack.c.bf16 %v254_v8, %v253_v6  ;;  %v241_v23 = vld [vmem:[%s2480_s1 + $0x6f0] sm:$0xff] }
  0x6d   :  { %v272_v14 = vld [vmem:[%s2480_s1 + $0x7e8] sm:$0xff]  ;;  %v1531_v18 = vpack.c.bf16 %v240_v10, %v239_v9  ;;  %v223_v19 = vld [vmem:[%s2480_s1 + $0x660] sm:$0xff]  ;;  %v242_v24 = vld [vmem:[%s2480_s1 + $0x6f8] sm:$0xff] }
  0x6e   :  { %1518 = vmatpush3.bf16.msra.mxu0 %v1517_v40  ;;  %v224_v20 = vld [vmem:[%s2480_s1 + $0x668] sm:$0xff]  ;;  %v255_v21 = vld [vmem:[%s2480_s1 + $0x760] sm:$0xff]  ;;  %v1563_v13 = vpack.c.bf16 %v272_v14, %v271_v12  ;;  %v273_v25 = vld [vmem:[%s2480_s1 + $0x7f0] sm:$0xff]  ;;  %v1535_v29 = vpack.c.bf16 %v242_v24, %v241_v23 }
  0x6f   :  { %1550 = vmatpush3.bf16.msra.mxu1 %v1549_v41  ;;  %1520 = vmatprep.subr.bf16.mxu0 %v1519_v43  ;;  %v256_v22 = vld [vmem:[%s2480_s1 + $0x768] sm:$0xff]  ;;  %v274_v26 = vld [vmem:[%s2480_s1 + $0x7f8] sm:$0xff]  ;;  %v1533_v27 = vpack.c.bf16 %v224_v20, %v223_v19  ;;  %v225_v30 = vld [vmem:[%s2480_s1 + $0x670] sm:$0xff]  ;;  %v1613_v41 = vmov 0.0  }
  0x70   :  { %1552 = vmatprep.subr.bf16.mxu1 %v1551_v48  ;;  %v1565_v28 = vpack.c.bf16 %v256_v22, %v255_v21  ;;  %v226_v31 = vld [vmem:[%s2480_s1 + $0x678] sm:$0xff]  ;;  %v1567_v42 = vpack.c.bf16 %v274_v26, %v273_v25  ;;  %v257_v32 = vld [vmem:[%s2480_s1 + $0x770] sm:$0xff]  ;;  %v924_v36 = vld [vmem:[%s2481_s2] sm:$0xff] }
  0x71   :  { %v258_v34 = vld [vmem:[%s2480_s1 + $0x778] sm:$0xff]  ;;  %v1537_v35 = vpack.c.bf16 %v226_v31, %v225_v30  ;;  %v925_v37 = vld [vmem:[%s2481_s2 + $0x8] sm:$0xff]  ;;  %v926_v40 = vld [vmem:[%s2481_s2 + $0x10] sm:$0xff] }
  0x72   :  { %1522 = vmatpush3.bf16.msra.mxu0 %v1521_v54  ;;  %v1569_v52 = vpack.c.bf16 %v258_v34, %v257_v32  ;;  %v1572_v38 = vpack.c.bf16 %v925_v37, %v924_v36 }
  0x73   :  { %1554 = vmatpush3.bf16.msra.mxu1 %v1553_v55  ;;  %1524 = vmatprep.subr.bf16.mxu0 %v1523_v56 }
  0x74   :  { %1556 = vmatprep.subr.bf16.mxu1 %v1555_v59 }
  0x76   :  { %1526 = vmatpush3.bf16.msra.mxu0 %v1525_v1 }
  0x77   :  { %1558 = vmatpush3.bf16.msra.mxu1 %v1557_v2  ;;  %1528 = vmatprep.subr.bf16.mxu0 %v1527_v3 }
  0x78   :  { %1560 = vmatprep.subr.bf16.mxu1 %v1559_v7 }
  0x7a   :  { %1530 = vmatpush3.bf16.msra.mxu0 %v1529_v16 }
  0x7b   :  { %1562 = vmatpush3.bf16.msra.mxu1 %v1561_v17  ;;  %1532 = vmatprep.subr.bf16.mxu0 %v1531_v18 }
  0x7c   :  { %1564 = vmatprep.subr.bf16.mxu1 %v1563_v13 }
  0x7e   :  { %1534 = vmatpush3.bf16.msra.mxu0 %v1533_v27 }
  0x7f   :  { %1566 = vmatpush3.bf16.msra.mxu1 %v1565_v28  ;;  %1536 = vmatprep.subr.bf16.mxu0 %v1535_v29 }
  0x80   :  { %1568 = vmatprep.subr.bf16.mxu1 %v1567_v42 }
  0x82   :  { %1538 = vmatpush3.bf16.msra.mxu0 %v1537_v35 }
  0x83   :  { %1570 = vmatpush3.bf16.msra.mxu1 %v1569_v52  ;;  %1571 = vmatprep.subr.bf16.mxu0 %v1611_v39 }
  0x85   :  { %848 = vmatmul.mubr.f32.vlgmr.msra.gmra.mrb[6].mxu0 %v2280_v11  ;;  %v927_v11 = vld [vmem:[%s2481_s2 + $0x18] sm:$0xff]  ;;  %s1614_s2 = smov [#allocation2]  }
  0x86   :  { %918 = vmatmul.mubr.f32.vlgmr.msra.gmra.mrb[6].mxu1 %v2289_v15  ;;  %1573 = vmatpush3.bf16.msra.mxu0 %v1572_v38  ;;  %v1575_v15 = vpack.c.bf16 %v927_v11, %v926_v40  ;;  %s1010_s21 = sshll.u32 %s1614_s2, 4  ;;  %s1011_s21 = int_to_ptr.vmem [resolvable:$true] %s1010_s21 }
  0x87   :  { %1574 = vmatprep.subr.bf16.mxu0 %v1611_v39  ;;  %1312 = vmatprep.mubr.msk.f32.mxu0 %vm1612_vm0, %v1613_v41  ;;  %s1586_s22 = scalar_lea.vmem %s1011_s21, 32  ;;  %p1591_p1 = scmp.lt.s32.totalorder %s1011_s21, %s1011_s21 }
  0x88   :  { %p1587_p0 = scmp.ne.s32.totalorder %s1011_s21, %s1586_s22  ;;  %p1592_p2 = scmp.lt.s32.totalorder %s1586_s22, %s1586_s22 }
  0x8a   :  { %1576 = vmatpush3.bf16.msra.mxu0 %v1575_v15  ;;  %p1593_p3 = por %p1592_p2, %p1591_p1 }
  0x8c   :  { %p1594_p4 = pnand %p1593_p3, %p1587_p0 }
  0xf8   :  { %v1051_v43 = vpop.f32.mrb[0].mxu0 }
  0xf9   :  { %v1086_v44 = vpop.f32.mrb[0].mxu1  ;;  %v1052_v46 = vpop.f32.mrb[1].mxu0 }
  0xfa   :  { %v1053_v47 = vadd.f32 %v1052_v46, %v1051_v43  ;;  %v1087_v48 = vpop.f32.mrb[1].mxu1 }
  0xfb   :  { %v1088_v49 = vadd.f32 %v1087_v48, %v1086_v44 }
  0xfd   :  { %v500_v50 = vadd.f32 %v1088_v49, %v1053_v47 }
 0x118   :  { %v1121_v51 = vpop.f32.mrb[2].mxu0 }
 0x119   :  { %v1122_v53 = vpop.f32.mrb[3].mxu0  ;;  %v1156_v33 = vpop.f32.mrb[2].mxu1 }
 0x11a   :  { %v1123_v54 = vadd.f32 %v1122_v53, %v1121_v51  ;;  %v1157_v55 = vpop.f32.mrb[3].mxu1 }
 0x11b   :  { %v1158_v56 = vadd.f32 %v1157_v55, %v1156_v33 }
 0x11c   :  { %v570_v57 = vadd.f32 %v1123_v54, %v500_v50 }
 0x11e   :  { %v640_v45 = vadd.f32 %v1158_v56, %v570_v57 }
 0x138   :  { %v1191_v58 = vpop.f32.mrb[4].mxu0 }
 0x139   :  { %v1192_v59 = vpop.f32.mrb[5].mxu0  ;;  %v1226_v60 = vpop.f32.mrb[4].mxu1 }
 0x13a   :  { %v1193_v61 = vadd.f32 %v1192_v59, %v1191_v58  ;;  %v1227_v62 = vpop.f32.mrb[5].mxu1 }
 0x13b   :  { %v1228_v63 = vadd.f32 %v1227_v62, %v1226_v60 }
 0x13c   :  { %v710_v0 = vadd.f32 %v1193_v61, %v640_v45 }
 0x13e   :  { %v780_v1 = vadd.f32 %v1228_v63, %v710_v0 }
 0x158   :  { %v1261_v2 = vpop.f32.mrb[6].mxu0 }
 0x159   :  { %v1262_v3 = vpop.f32.mrb[7].mxu0  ;;  %v1296_v4 = vpop.f32.mrb[6].mxu1 }
 0x15a   :  { %v1263_v5 = vadd.f32 %v1262_v3, %v1261_v2  ;;  %v1297_v6 = vpop.f32.mrb[7].mxu1 }
 0x15b   :  { %v1298_v7 = vadd.f32 %v1297_v6, %v1296_v4 }
 0x15c   :  { %v850_v8 = vadd.f32 %v1263_v5, %v780_v1 }
 0x15e   :  { %v920_v9 = vadd.f32 %v1298_v7, %v850_v8 }
 0x160   :  { %v923_v10 = vmax.f32 %v920_v9, 0.0 }
 0x162   :  { %1313 = vmatmul.mubr.msk.f32.vlgmr.msra.gmra.mrb[8].mxu0 %vm928_vm1, %v923_v10 }
 0x235   :  { %v998_v12 = vpop.f32.mrb[8].mxu0 }
 0x236   :  { %1003 = vst.msk [vmem:[#allocation2] sm:$0x3] %vm1002_vm2, %v998_v12  ;;  %v1314_v14 = vpop.f32.mrb[9].mxu0 }
 0x237   :  { %1597 = shalt.err (!%p1594_p4)
}
 0x238   :  { %s1598_s0 = scalar_lea.hbm %s2482_s3, 32 }
 0x239   :  { %p1599_p5 = scmp.ne.s32.totalorder %s2482_s3, %s1598_s0  ;;  %p1602_p6 = scmp.lt.u32.totalorder %s1598_s0, %s2482_s3 }
 0x23b   :  { %p1604_p7 = pnand %p1602_p6, %p1599_p5 }
 0x23d   :  { %1607 = shalt.err (!%p1604_p7)
}
 0x23e   :  { %1013 = dma.vmem_to_hbm [thread:$0]  %s1011_s21, 32, %s2482_s3, [#allocation3]  }
 0x23f   :  { %1608 = dma.done.wait [#allocation3], 32  }
 0x240   :  { %1609 = vsyncadd [#allocation3], 4294967264 }
 0x241   :  { %1017 = vsyncpa [#allocation3], 1 }

</bundles_post_ra>
